<compile_context>
chip_gen: v6e
topology: v6e:2x2x1
jax: 0.10.0
libtpu: 0.0.40
codegen_flags: <defaults>
</compile_context>

<pallas_src>
import math
from functools import partial

import jax
import jax.numpy as jnp
from jax import lax
from jax.experimental import pallas as pl
from jax.experimental.pallas import tpu as pltpu


# ----------------------------------------------------------------------------
# Fused kernel: grid=(batch, layer); one residual block per grid step.
# The residual stream stays resident in the output VMEM block across layers.
# ----------------------------------------------------------------------------
def _transformer_kernel(x_ref,
                        ln1w_ref, ln1b_ref,
                        wqkv_ref, bqkv_ref,
                        wo_ref, bo_ref,
                        ln2w_ref, ln2b_ref,
                        wfc_ref, bfc_ref,
                        wproj_ref, bproj_ref,
                        o_ref,
                        attn_scr,
                        *, d_model: int, n_head: int, s_valid: int):
    head_dim = d_model // n_head
    inv_sqrt2 = 1.0 / math.sqrt(2.0)
    eps = 1e-5
    bf16 = jnp.bfloat16

    layer = pl.program_id(1)

    # Initialise the resident residual stream from the input at layer 0.
    @pl.when(layer == 0)
    def _():
        o_ref[0] = x_ref[0]

    x = o_ref[0]                              # (S_pad, D) f32 residual stream
    s_pad = x.shape[0]

    def layer_norm(v, w, b):
        mu = jnp.mean(v, axis=-1, keepdims=True)
        var = jnp.mean((v - mu) * (v - mu), axis=-1, keepdims=True)
        return (v - mu) * lax.rsqrt(var + eps) * w + b

    # ---- attention branch ---------------------------------------------------
    h = layer_norm(x, ln1w_ref[0], ln1b_ref[0])                         # f32
    # fused QKV projection; the 1/sqrt(head_dim) scale is pre-folded into the
    # q columns of wqkv / bqkv at parameter-construction time.
    qkv = jnp.dot(h.astype(bf16), wqkv_ref[0],
                  preferred_element_type=jnp.float32) + bqkv_ref[0]     # (S, 3D)
    q = qkv[:, 0 * d_model:1 * d_model]
    k = qkv[:, 1 * d_model:2 * d_model]
    v = qkv[:, 2 * d_model:3 * d_model]

    # key mask for padded sequence positions (static; only traced if padded)
    if s_valid < s_pad:
        key_ids = lax.broadcasted_iota(jnp.int32, (1, s_pad), 1)
        key_bias = jnp.where(key_ids < s_valid, 0.0, -1e30).astype(jnp.float32)
    else:
        key_bias = None

    # TODO(synk): at n_head >= 12 switch to lax.fori_loop over heads (bounds
    # live ranges / avoids spills) or a flash-style head-batched dot_general
    # with K-tile streaming for long sequences.
    for hidx in range(n_head):
        lo = hidx * head_dim
        hi = lo + head_dim
        qh = q[:, lo:hi].astype(bf16)                                   # (S, hd)
        kh = k[:, lo:hi].astype(bf16)
        vh = v[:, lo:hi].astype(bf16)
        # scores: contract last dims directly (no per-head XLU transpose)
        s = lax.dot_general(qh, kh, (((1,), (1,)), ((), ())),
                            preferred_element_type=jnp.float32)         # (S, S)
        if key_bias is not None:
            s = s + key_bias
        m = jnp.max(s, axis=-1, keepdims=True)
        p = jnp.exp(s - m)                                              # unnormalized
        denom = jnp.sum(p, axis=-1, keepdims=True)                      # (S, 1)
        ho = jnp.dot(p.astype(bf16), vh,
                     preferred_element_type=jnp.float32)                # (S, hd)
        # deferred, exact normalization on the small (S, hd) result
        attn_scr[:, lo:hi] = (ho / denom).astype(bf16)                  # no concat

    attn = jnp.dot(attn_scr[...], wo_ref[0],
                   preferred_element_type=jnp.float32) + bo_ref[0]      # (S, D)
    x = x + attn

    # ---- MLP branch ----------------------------------------------------------
    h2 = layer_norm(x, ln2w_ref[0], ln2b_ref[0])
    f = jnp.dot(h2.astype(bf16), wfc_ref[0],
                preferred_element_type=jnp.float32) + bfc_ref[0]        # (S, 4D)
    # exact (erf) GELU, matching nn.GELU(approximate='none'), f32 on the VPU
    f = 0.5 * f * (1.0 + lax.erf(f * inv_sqrt2))
    f = jnp.dot(f.astype(bf16), wproj_ref[0],
                preferred_element_type=jnp.float32) + bproj_ref[0]      # (S, D)

    o_ref[0] = x + f


# ----------------------------------------------------------------------------
# VMEM budget derived from the real per-generation capacity (v7x: 64 MiB).
# ----------------------------------------------------------------------------
def _vmem_capacity_bytes():
    try:
        return int(pltpu.get_tpu_info().vmem_capacity_bytes)
    except Exception:
        return 64 * 1024 * 1024                      # conservative fallback


def _vmem_limit_bytes(S, D, mlp_w):
    # bf16 weights, double-buffered (buffers layer l+1 while computing layer l)
    wt = 2 * 2 * (3 * D * D + D * D + 2 * D * mlp_w)
    # f32 LN params / biases, double-buffered
    small = 2 * 4 * (4 * D + 3 * D + D + mlp_w + D)
    # x / out f32 blocks, double-buffered
    io = 2 * 2 * 4 * S * D
    # in-kernel activations (f32 + bf16 temporaries) + attn scratch (bf16)
    act = 4 * (10 * S * D + 2 * S * S + 2 * S * mlp_w) \
        + 2 * (5 * S * D + S * mlp_w)
    total = wt + small + io + act + (6 << 20)        # headroom for internals
    hard_cap = _vmem_capacity_bytes() - (8 << 20)    # stay below physical VMEM
    return int(max(min(total, hard_cap), min(32 * 1024 * 1024, hard_cap)))


# ----------------------------------------------------------------------------
# Wrapper: full transformer in one pallas_call.
# x_lnd: (L_seq, N, D) seq-first (PyTorch layout). Returns same layout.
# ----------------------------------------------------------------------------
def transformer_pallas(x_lnd, sp, *, n_head):
    S_in, N, D = x_lnd.shape
    NL = sp["wqkv"].shape[0]
    mlp_w = sp["wfc"].shape[2]

    x = jnp.transpose(x_lnd, (1, 0, 2)).astype(jnp.float32)   # (N, S, D)
    s_pad = -(-S_in // 16) * 16                                # bf16 min tile = (16,128)
    if s_pad != S_in:
        x = jnp.pad(x, ((0, 0), (0, s_pad - S_in), (0, 0)))
    B, S, _ = x.shape

    # Per-layer weight/bias block: indexed by the layer grid axis so the
    # pipeline (default 2 buffers) prefetches layer l+1 while layer l computes.
    def wspec(*trailing):
        return pl.BlockSpec((1,) + trailing, lambda b, l: (l,) + (0,) * len(trailing))

    kernel = partial(_transformer_kernel, d_model=D, n_head=n_head, s_valid=S_in)

    # TODO(synk): for v7x at CLIP-L sizes, tile the 4*D MLP hidden dim (or
    # single-buffer wfc/wproj) so 2x-buffered weights fit in 64 MiB, and add a
    # parallel q-tile grid axis so the second TensorCore gets work at B<2.
    out = pl.pallas_call(
        kernel,
        out_shape=jax.ShapeDtypeStruct((B, S, D), jnp.float32),
        grid_spec=pltpu.PrefetchScalarGridSpec(
            num_scalar_prefetch=0,
            grid=(B, NL),                                      # layers innermost
            in_specs=[
                pl.BlockSpec((1, S, D), lambda b, l: (b, 0, 0)),   # x (fetched once per b)
                wspec(1, D), wspec(1, D),                          # ln1 w,b   (f32)
                wspec(D, 3 * D), wspec(1, 3 * D),                  # in_proj   (bf16 W)
                wspec(D, D), wspec(1, D),                          # out_proj  (bf16 W)
                wspec(1, D), wspec(1, D),                          # ln2 w,b   (f32)
                wspec(D, mlp_w), wspec(1, mlp_w),                  # c_fc      (bf16 W)
                wspec(mlp_w, D), wspec(1, D),                      # c_proj    (bf16 W)
            ],
            # residual stream: resident in VMEM across the layer axis
            out_specs=pl.BlockSpec((1, S, D), lambda b, l: (b, 0, 0)),
            scratch_shapes=[pltpu.VMEM((S, D), jnp.bfloat16)],     # head-concat buffer
        ),
        compiler_params=pltpu.CompilerParams(
            dimension_semantics=("parallel", "arbitrary"),
            vmem_limit_bytes=_vmem_limit_bytes(S, D, mlp_w)),
    )(x,
      sp["ln1w"], sp["ln1b"],
      sp["wqkv"], sp["bqkv"],
      sp["wo"], sp["bo"],
      sp["ln2w"], sp["ln2b"],
      sp["wfc"], sp["bfc"],
      sp["wproj"], sp["bproj"])

    out = out[:, :S_in]
    return jnp.transpose(out, (1, 0, 2))


# ----------------------------------------------------------------------------
# Pure-JAX reference (mirrors the PyTorch forward, f32 matmuls) for checking.
# ----------------------------------------------------------------------------
def _ref_block(x, p, n_head):
    D = x.shape[-1]
    hd = D // n_head

    def ln(v, w, b):
        mu = jnp.mean(v, -1, keepdims=True)
        var = jnp.mean((v - mu) ** 2, -1, keepdims=True)
        return (v - mu) / jnp.sqrt(var + 1e-5) * w + b

    h = ln(x, p["ln1w"], p["ln1b"])
    qkv = h @ p["wqkv"] + p["bqkv"]
    q, k, v = jnp.split(qkv, 3, axis=-1)
    B, S, _ = x.shape
    q = q.reshape(B, S, n_head, hd).transpose(0, 2, 1, 3) / math.sqrt(hd)
    k = k.reshape(B, S, n_head, hd).transpose(0, 2, 1, 3)
    v = v.reshape(B, S, n_head, hd).transpose(0, 2, 1, 3)
    s = jnp.einsum("bhqd,bhkd->bhqk", q, k)
    a = jax.nn.softmax(s, axis=-1)
    o = jnp.einsum("bhqk,bhkd->bhqd", a, v).transpose(0, 2, 1, 3).reshape(B, S, D)
    x = x + (o @ p["wo"] + p["bo"])
    h2 = ln(x, p["ln2w"], p["ln2b"])
    f = h2 @ p["wfc"] + p["bfc"]
    f = 0.5 * f * (1.0 + lax.erf(f / math.sqrt(2.0)))
    return x + (f @ p["wproj"] + p["bproj"])


def _ref_transformer(x_lnd, layer_params, n_head):
    x = jnp.transpose(x_lnd, (1, 0, 2)).astype(jnp.float32)
    for p in layer_params:
        x = _ref_block(x, p, n_head)
    return jnp.transpose(x, (1, 0, 2))


# ----------------------------------------------------------------------------
# Parameters. make_layer_params builds canonical f32 params (shapes match the
# nn.Module, Linear weights pre-transposed to (in, out)); stack_kernel_params
# stacks them along a layer axis, folds the q scale, and casts matmul weights
# to bf16 (MXU-native) — all at build time.
# ----------------------------------------------------------------------------
def make_layer_params(key, d_model, mlp_ratio=4.0):
    mlp_w = int(d_model * mlp_ratio)
    ks = jax.random.split(key, 8)
    n = lambda k, shp, s=0.02: (s * jax.random.normal(k, shp)).astype(jnp.float32)
    return {
        "ln1w": jnp.ones((d_model,), jnp.float32),
        "ln1b": jnp.zeros((d_model,), jnp.float32),
        "wqkv": n(ks[0], (d_model, 3 * d_model)),
        "bqkv": n(ks[1], (3 * d_model,)),
        "wo": n(ks[2], (d_model, d_model)),
        "bo": n(ks[3], (d_model,)),
        "ln2w": jnp.ones((d_model,), jnp.float32),
        "ln2b": jnp.zeros((d_model,), jnp.float32),
        "wfc": n(ks[4], (d_model, mlp_w)),
        "bfc": n(ks[5], (mlp_w,)),
        "wproj": n(ks[6], (mlp_w, d_model)),
        "bproj": n(ks[7], (d_model,)),
    }


def stack_kernel_params(layer_params, n_head):
    D = layer_params[0]["wqkv"].shape[0]
    head_dim = D // n_head
    scale = 1.0 / math.sqrt(head_dim)

    stack = lambda name: jnp.stack([p[name] for p in layer_params], axis=0)
    as3 = lambda a: a[:, None, :]                        # (L, dim) -> (L, 1, dim)

    # fold 1/sqrt(head_dim) into the q output columns (build-time constant fold)
    qscale = jnp.concatenate([jnp.full((D,), scale, jnp.float32),
                              jnp.ones((2 * D,), jnp.float32)])
    wqkv = stack("wqkv") * qscale
    bqkv = stack("bqkv") * qscale

    return {
        "ln1w": as3(stack("ln1w")), "ln1b": as3(stack("ln1b")),
        "wqkv": wqkv.astype(jnp.bfloat16), "bqkv": as3(bqkv),
        "wo": stack("wo").astype(jnp.bfloat16), "bo": as3(stack("bo")),
        "ln2w": as3(stack("ln2w")), "ln2b": as3(stack("ln2b")),
        "wfc": stack("wfc").astype(jnp.bfloat16), "bfc": as3(stack("bfc")),
        "wproj": stack("wproj").astype(jnp.bfloat16), "bproj": as3(stack("bproj")),
    }


if __name__ == "__main__":
    # small shapes: width=32, heads=4, layers=2, seq=8, batch=2
    WIDTH, HEADS, LAYERS, SEQ, BATCH = 32, 4, 2, 8, 2

    key = jax.random.PRNGKey(0)
    k_x, *k_layers = jax.random.split(key, LAYERS + 1)
    x = jax.random.normal(k_x, (SEQ, BATCH, WIDTH), dtype=jnp.float32)  # (L, N, D)
    layer_params = [make_layer_params(k, WIDTH) for k in k_layers]
    kernel_params = stack_kernel_params(layer_params, HEADS)

    # TODO(synk): attn_mask path not implemented (forward is called with attn_mask=None).
    out = transformer_pallas(x, kernel_params, n_head=HEADS)
    out = jax.block_until_ready(out)

    ref = _ref_transformer(x, layer_params, HEADS)
    assert out.shape == (SEQ, BATCH, WIDTH)
    # bf16 MXU weights vs. the f32 reference -> relaxed tolerance
    assert jnp.allclose(out, ref, atol=2e-2, rtol=2e-2), "mismatch vs reference"

    print("KERNEL_OK")
</pallas_src>

<mosaic_0001>
module attributes {stable_mosaic.version = 11 : i64} {
  func.func @_transformer_kernel(%arg0: i32, %arg1: i32, %arg2: memref<1x16x32xf32, #tpu.memory_space<vmem>>, %arg3: memref<1x1x32xf32, #tpu.memory_space<vmem>>, %arg4: memref<1x1x32xf32, #tpu.memory_space<vmem>>, %arg5: memref<1x32x96xbf16, #tpu.memory_space<vmem>>, %arg6: memref<1x1x96xf32, #tpu.memory_space<vmem>>, %arg7: memref<1x32x32xbf16, #tpu.memory_space<vmem>>, %arg8: memref<1x1x32xf32, #tpu.memory_space<vmem>>, %arg9: memref<1x1x32xf32, #tpu.memory_space<vmem>>, %arg10: memref<1x1x32xf32, #tpu.memory_space<vmem>>, %arg11: memref<1x32x128xbf16, #tpu.memory_space<vmem>>, %arg12: memref<1x1x128xf32, #tpu.memory_space<vmem>>, %arg13: memref<1x128x32xbf16, #tpu.memory_space<vmem>>, %arg14: memref<1x1x32xf32, #tpu.memory_space<vmem>>, %arg15: memref<1x16x32xf32, #tpu.memory_space<vmem>>, %arg16: memref<16x32xbf16, #tpu.memory_space<vmem>>) attributes {dimension_semantics = [#tpu.dimension_semantics<parallel>, #tpu.dimension_semantics<arbitrary>], iteration_bounds = array<i64: 2, 2>, scalar_prefetch = 0 : i64, scratch_operands = 1 : i64, tpu.core_type = #tpu.core_type<tc>, window_params = [{transform_indices = @transform_0, window_bounds = array<i64: 1, 16, 32>}, {transform_indices = @transform_1, window_bounds = array<i64: 1, 1, 32>}, {transform_indices = @transform_2, window_bounds = array<i64: 1, 1, 32>}, {transform_indices = @transform_3, window_bounds = array<i64: 1, 32, 96>}, {transform_indices = @transform_4, window_bounds = array<i64: 1, 1, 96>}, {transform_indices = @transform_5, window_bounds = array<i64: 1, 32, 32>}, {transform_indices = @transform_6, window_bounds = array<i64: 1, 1, 32>}, {transform_indices = @transform_7, window_bounds = array<i64: 1, 1, 32>}, {transform_indices = @transform_8, window_bounds = array<i64: 1, 1, 32>}, {transform_indices = @transform_9, window_bounds = array<i64: 1, 32, 128>}, {transform_indices = @transform_10, window_bounds = array<i64: 1, 1, 128>}, {transform_indices = @transform_11, window_bounds = array<i64: 1, 128, 32>}, {transform_indices = @transform_12, window_bounds = array<i64: 1, 1, 32>}, {transform_indices = @transform_13, window_bounds = array<i64: 1, 16, 32>}]} {
    %c0_i32 = arith.constant 0 : i32
    %0 = arith.cmpi eq, %arg1, %c0_i32 : i32
    %1 = arith.extui %0 : i1 to i32
    %c0_i32_0 = arith.constant 0 : i32
    %2 = arith.cmpi ne, %1, %c0_i32_0 : i32
    scf.if %2 {
      %c0_83 = arith.constant 0 : index
      %c0_84 = arith.constant 0 : index
      %c0_85 = arith.constant 0 : index
      %203 = vector.load %arg2[%c0_83, %c0_84, %c0_85] : memref<1x16x32xf32, #tpu.memory_space<vmem>>, vector<1x16x32xf32>
      %204 = vector.shape_cast %203 : vector<1x16x32xf32> to vector<16x32xf32>
      %c0_86 = arith.constant 0 : index
      %c0_87 = arith.constant 0 : index
      %c0_88 = arith.constant 0 : index
      %205 = vector.load %arg15[%c0_86, %c0_87, %c0_88] : memref<1x16x32xf32, #tpu.memory_space<vmem>>, vector<1x16x32xf32>
      %206 = vector.shape_cast %205 : vector<1x16x32xf32> to vector<16x32xf32>
      %207 = vector.shape_cast %204 : vector<16x32xf32> to vector<1x16x32xf32>
      tpu.vector_store %arg15[%c0_86, %c0_87, %c0_88], %207 {strides = array<i32>} : memref<1x16x32xf32, #tpu.memory_space<vmem>>, vector<1x16x32xf32>,
    } else {
    }
    %c0 = arith.constant 0 : index
    %c0_1 = arith.constant 0 : index
    %c0_2 = arith.constant 0 : index
    %3 = vector.load %arg15[%c0, %c0_1, %c0_2] : memref<1x16x32xf32, #tpu.memory_space<vmem>>, vector<1x16x32xf32>
    %4 = vector.shape_cast %3 : vector<1x16x32xf32> to vector<16x32xf32>
    %c0_3 = arith.constant 0 : index
    %c0_4 = arith.constant 0 : index
    %c0_5 = arith.constant 0 : index
    %5 = vector.load %arg3[%c0_3, %c0_4, %c0_5] : memref<1x1x32xf32, #tpu.memory_space<vmem>>, vector<1x1x32xf32>
    %6 = vector.shape_cast %5 : vector<1x1x32xf32> to vector<1x32xf32>
    %c0_6 = arith.constant 0 : index
    %c0_7 = arith.constant 0 : index
    %c0_8 = arith.constant 0 : index
    %7 = vector.load %arg4[%c0_6, %c0_7, %c0_8] : memref<1x1x32xf32, #tpu.memory_space<vmem>>, vector<1x1x32xf32>
    %8 = vector.shape_cast %7 : vector<1x1x32xf32> to vector<1x32xf32>
    %cst = arith.constant dense<0.000000e+00> : vector<16xf32>
    %9 = vector.multi_reduction <add>, %4, %cst [1] : vector<16x32xf32> to vector<16xf32>
    %10 = vector.shape_cast %9 : vector<16xf32> to vector<16x1xf32>
    %cst_9 = arith.constant 3.200000e+01 : f32
    %11 = vector.broadcast %cst_9 : f32 to vector<16x1xf32>
    %12 = arith.divf %10, %11 : vector<16x1xf32>
    %13 = vector.broadcast %12 : vector<16x1xf32> to vector<16x32xf32>
    %14 = arith.subf %4, %13 : vector<16x32xf32>
    %15 = vector.broadcast %12 : vector<16x1xf32> to vector<16x32xf32>
    %16 = arith.subf %4, %15 : vector<16x32xf32>
    %17 = arith.mulf %14, %16 : vector<16x32xf32>
    %cst_10 = arith.constant dense<0.000000e+00> : vector<16xf32>
    %18 = vector.multi_reduction <add>, %17, %cst_10 [1] : vector<16x32xf32> to vector<16xf32>
    %19 = vector.shape_cast %18 : vector<16xf32> to vector<16x1xf32>
    %cst_11 = arith.constant 3.200000e+01 : f32
    %20 = vector.broadcast %cst_11 : f32 to vector<16x1xf32>
    %21 = arith.divf %19, %20 : vector<16x1xf32>
    %22 = vector.broadcast %12 : vector<16x1xf32> to vector<16x32xf32>
    %23 = arith.subf %4, %22 : vector<16x32xf32>
    %cst_12 = arith.constant 9.99999974E-6 : f32
    %24 = vector.broadcast %cst_12 : f32 to vector<16x1xf32>
    %25 = arith.addf %21, %24 : vector<16x1xf32>
    %26 = math.rsqrt %25 : vector<16x1xf32>
    %27 = vector.broadcast %26 : vector<16x1xf32> to vector<16x32xf32>
    %28 = arith.mulf %23, %27 : vector<16x32xf32>
    %29 = vector.broadcast %6 : vector<1x32xf32> to vector<16x32xf32>
    %30 = arith.mulf %28, %29 : vector<16x32xf32>
    %31 = vector.broadcast %8 : vector<1x32xf32> to vector<16x32xf32>
    %32 = arith.addf %30, %31 : vector<16x32xf32>
    %33 = arith.truncf %32 : vector<16x32xf32> to vector<16x32xbf16>
    %c0_13 = arith.constant 0 : index
    %c0_14 = arith.constant 0 : index
    %c0_15 = arith.constant 0 : index
    %34 = vector.load %arg5[%c0_13, %c0_14, %c0_15] : memref<1x32x96xbf16, #tpu.memory_space<vmem>>, vector<1x32x96xbf16>
    %35 = vector.shape_cast %34 : vector<1x32x96xbf16> to vector<32x96xbf16>
    %cst_16 = arith.constant dense<0.000000e+00> : vector<16x96xf32>
    %36 = tpu.matmul %33, %35, %cst_16 {dimension_numbers = #tpu.dot_dimension_numbers<[1], [0], [0], [1], [0, 0, 1, 1], [], []>} : vector<16x32xbf16>, vector<32x96xbf16>, vector<16x96xf32> -> vector<16x96xf32>
    %c0_17 = arith.constant 0 : index
    %c0_18 = arith.constant 0 : index
    %c0_19 = arith.constant 0 : index
    %37 = vector.load %arg6[%c0_17, %c0_18, %c0_19] : memref<1x1x96xf32, #tpu.memory_space<vmem>>, vector<1x1x96xf32>
    %38 = vector.shape_cast %37 : vector<1x1x96xf32> to vector<1x96xf32>
    %39 = vector.broadcast %38 : vector<1x96xf32> to vector<16x96xf32>
    %40 = arith.addf %36, %39 : vector<16x96xf32>
    %41 = vector.extract_strided_slice %40 {offsets = [0, 0], sizes = [16, 32], strides = [1, 1]} : vector<16x96xf32> to vector<16x32xf32>
    %42 = vector.extract_strided_slice %40 {offsets = [0, 32], sizes = [16, 32], strides = [1, 1]} : vector<16x96xf32> to vector<16x32xf32>
    %43 = vector.extract_strided_slice %40 {offsets = [0, 64], sizes = [16, 32], strides = [1, 1]} : vector<16x96xf32> to vector<16x32xf32>
    %44 = tpu.iota {dimensions = array<i32: 1>} : vector<1x16xi32>
    %c8_i32 = arith.constant 8 : i32
    %45 = vector.broadcast %c8_i32 : i32 to vector<1x16xi32>
    %46 = arith.cmpi slt, %44, %45 : vector<1x16xi32>
    %cst_20 = arith.constant 0.000000e+00 : f32
    %cst_21 = arith.constant -1.000000e+30 : f32
    %47 = vector.broadcast %cst_20 : f32 to vector<1x16xf32>
    %48 = vector.broadcast %cst_21 : f32 to vector<1x16xf32>
    %49 = arith.select %46, %47, %48 : vector<1x16xi1>, vector<1x16xf32>
    %50 = vector.extract_strided_slice %41 {offsets = [0, 0], sizes = [16, 8], strides = [1, 1]} : vector<16x32xf32> to vector<16x8xf32>
    %51 = arith.truncf %50 : vector<16x8xf32> to vector<16x8xbf16>
    %52 = vector.extract_strided_slice %42 {offsets = [0, 0], sizes = [16, 8], strides = [1, 1]} : vector<16x32xf32> to vector<16x8xf32>
    %53 = arith.truncf %52 : vector<16x8xf32> to vector<16x8xbf16>
    %54 = vector.extract_strided_slice %43 {offsets = [0, 0], sizes = [16, 8], strides = [1, 1]} : vector<16x32xf32> to vector<16x8xf32>
    %55 = arith.truncf %54 : vector<16x8xf32> to vector<16x8xbf16>
    %cst_22 = arith.constant dense<0.000000e+00> : vector<16x16xf32>
    %56 = tpu.matmul %51, %53, %cst_22 {dimension_numbers = #tpu.dot_dimension_numbers<[1], [1], [0], [0], [0, 0, 1, 0], [], []>} : vector<16x8xbf16>, vector<16x8xbf16>, vector<16x16xf32> -> vector<16x16xf32>
    %57 = vector.broadcast %49 : vector<1x16xf32> to vector<16x16xf32>
    %58 = arith.addf %56, %57 : vector<16x16xf32>
    %cst_23 = arith.constant dense<0xFF800000> : vector<16xf32>
    %59 = vector.multi_reduction <maximumf>, %58, %cst_23 [1] : vector<16x16xf32> to vector<16xf32>
    %60 = vector.shape_cast %59 : vector<16xf32> to vector<16x1xf32>
    %61 = vector.broadcast %60 : vector<16x1xf32> to vector<16x16xf32>
    %62 = arith.subf %58, %61 : vector<16x16xf32>
    %63 = math.exp %62 : vector<16x16xf32>
    %cst_24 = arith.constant dense<0.000000e+00> : vector<16xf32>
    %64 = vector.multi_reduction <add>, %63, %cst_24 [1] : vector<16x16xf32> to vector<16xf32>
    %65 = vector.shape_cast %64 : vector<16xf32> to vector<16x1xf32>
    %66 = arith.truncf %63 : vector<16x16xf32> to vector<16x16xbf16>
    %cst_25 = arith.constant dense<0.000000e+00> : vector<16x8xf32>
    %67 = tpu.matmul %66, %55, %cst_25 {dimension_numbers = #tpu.dot_dimension_numbers<[1], [0], [0], [1], [0, 0, 1, 1], [], []>} : vector<16x16xbf16>, vector<16x8xbf16>, vector<16x8xf32> -> vector<16x8xf32>
    %68 = vector.broadcast %65 : vector<16x1xf32> to vector<16x8xf32>
    %69 = arith.divf %67, %68 : vector<16x8xf32>
    %70 = arith.truncf %69 : vector<16x8xf32> to vector<16x8xbf16>
    %c0_26 = arith.constant 0 : index
    %c0_27 = arith.constant 0 : index
    %71 = vector.load %arg16[%c0_26, %c0_27] : memref<16x32xbf16, #tpu.memory_space<vmem>>, vector<16x8xbf16>
    tpu.vector_store %arg16[%c0_26, %c0_27], %70 {strides = array<i32>} : memref<16x32xbf16, #tpu.memory_space<vmem>>, vector<16x8xbf16>,
    %72 = vector.extract_strided_slice %41 {offsets = [0, 8], sizes = [16, 8], strides = [1, 1]} : vector<16x32xf32> to vector<16x8xf32>
    %73 = arith.truncf %72 : vector<16x8xf32> to vector<16x8xbf16>
    %74 = vector.extract_strided_slice %42 {offsets = [0, 8], sizes = [16, 8], strides = [1, 1]} : vector<16x32xf32> to vector<16x8xf32>
    %75 = arith.truncf %74 : vector<16x8xf32> to vector<16x8xbf16>
    %76 = vector.extract_strided_slice %43 {offsets = [0, 8], sizes = [16, 8], strides = [1, 1]} : vector<16x32xf32> to vector<16x8xf32>
    %77 = arith.truncf %76 : vector<16x8xf32> to vector<16x8xbf16>
    %cst_28 = arith.constant dense<0.000000e+00> : vector<16x16xf32>
    %78 = tpu.matmul %73, %75, %cst_28 {dimension_numbers = #tpu.dot_dimension_numbers<[1], [1], [0], [0], [0, 0, 1, 0], [], []>} : vector<16x8xbf16>, vector<16x8xbf16>, vector<16x16xf32> -> vector<16x16xf32>
    %79 = vector.broadcast %49 : vector<1x16xf32> to vector<16x16xf32>
    %80 = arith.addf %78, %79 : vector<16x16xf32>
    %cst_29 = arith.constant dense<0xFF800000> : vector<16xf32>
    %81 = vector.multi_reduction <maximumf>, %80, %cst_29 [1] : vector<16x16xf32> to vector<16xf32>
    %82 = vector.shape_cast %81 : vector<16xf32> to vector<16x1xf32>
    %83 = vector.broadcast %82 : vector<16x1xf32> to vector<16x16xf32>
    %84 = arith.subf %80, %83 : vector<16x16xf32>
    %85 = math.exp %84 : vector<16x16xf32>
    %cst_30 = arith.constant dense<0.000000e+00> : vector<16xf32>
    %86 = vector.multi_reduction <add>, %85, %cst_30 [1] : vector<16x16xf32> to vector<16xf32>
    %87 = vector.shape_cast %86 : vector<16xf32> to vector<16x1xf32>
    %88 = arith.truncf %85 : vector<16x16xf32> to vector<16x16xbf16>
    %cst_31 = arith.constant dense<0.000000e+00> : vector<16x8xf32>
    %89 = tpu.matmul %88, %77, %cst_31 {dimension_numbers = #tpu.dot_dimension_numbers<[1], [0], [0], [1], [0, 0, 1, 1], [], []>} : vector<16x16xbf16>, vector<16x8xbf16>, vector<16x8xf32> -> vector<16x8xf32>
    %90 = vector.broadcast %87 : vector<16x1xf32> to vector<16x8xf32>
    %91 = arith.divf %89, %90 : vector<16x8xf32>
    %92 = arith.truncf %91 : vector<16x8xf32> to vector<16x8xbf16>
    %c0_32 = arith.constant 0 : index
    %c8 = arith.constant 8 : index
    %93 = vector.load %arg16[%c0_32, %c8] : memref<16x32xbf16, #tpu.memory_space<vmem>>, vector<16x8xbf16>
    tpu.vector_store %arg16[%c0_32, %c8], %92 {strides = array<i32>} : memref<16x32xbf16, #tpu.memory_space<vmem>>, vector<16x8xbf16>,
    %94 = vector.extract_strided_slice %41 {offsets = [0, 16], sizes = [16, 8], strides = [1, 1]} : vector<16x32xf32> to vector<16x8xf32>
    %95 = arith.truncf %94 : vector<16x8xf32> to vector<16x8xbf16>
    %96 = vector.extract_strided_slice %42 {offsets = [0, 16], sizes = [16, 8], strides = [1, 1]} : vector<16x32xf32> to vector<16x8xf32>
    %97 = arith.truncf %96 : vector<16x8xf32> to vector<16x8xbf16>
    %98 = vector.extract_strided_slice %43 {offsets = [0, 16], sizes = [16, 8], strides = [1, 1]} : vector<16x32xf32> to vector<16x8xf32>
    %99 = arith.truncf %98 : vector<16x8xf32> to vector<16x8xbf16>
    %cst_33 = arith.constant dense<0.000000e+00> : vector<16x16xf32>
    %100 = tpu.matmul %95, %97, %cst_33 {dimension_numbers = #tpu.dot_dimension_numbers<[1], [1], [0], [0], [0, 0, 1, 0], [], []>} : vector<16x8xbf16>, vector<16x8xbf16>, vector<16x16xf32> -> vector<16x16xf32>
    %101 = vector.broadcast %49 : vector<1x16xf32> to vector<16x16xf32>
    %102 = arith.addf %100, %101 : vector<16x16xf32>
    %cst_34 = arith.constant dense<0xFF800000> : vector<16xf32>
    %103 = vector.multi_reduction <maximumf>, %102, %cst_34 [1] : vector<16x16xf32> to vector<16xf32>
    %104 = vector.shape_cast %103 : vector<16xf32> to vector<16x1xf32>
    %105 = vector.broadcast %104 : vector<16x1xf32> to vector<16x16xf32>
    %106 = arith.subf %102, %105 : vector<16x16xf32>
    %107 = math.exp %106 : vector<16x16xf32>
    %cst_35 = arith.constant dense<0.000000e+00> : vector<16xf32>
    %108 = vector.multi_reduction <add>, %107, %cst_35 [1] : vector<16x16xf32> to vector<16xf32>
    %109 = vector.shape_cast %108 : vector<16xf32> to vector<16x1xf32>
    %110 = arith.truncf %107 : vector<16x16xf32> to vector<16x16xbf16>
    %cst_36 = arith.constant dense<0.000000e+00> : vector<16x8xf32>
    %111 = tpu.matmul %110, %99, %cst_36 {dimension_numbers = #tpu.dot_dimension_numbers<[1], [0], [0], [1], [0, 0, 1, 1], [], []>} : vector<16x16xbf16>, vector<16x8xbf16>, vector<16x8xf32> -> vector<16x8xf32>
    %112 = vector.broadcast %109 : vector<16x1xf32> to vector<16x8xf32>
    %113 = arith.divf %111, %112 : vector<16x8xf32>
    %114 = arith.truncf %113 : vector<16x8xf32> to vector<16x8xbf16>
    %c0_37 = arith.constant 0 : index
    %c16 = arith.constant 16 : index
    %115 = vector.load %arg16[%c0_37, %c16] : memref<16x32xbf16, #tpu.memory_space<vmem>>, vector<16x8xbf16>
    tpu.vector_store %arg16[%c0_37, %c16], %114 {strides = array<i32>} : memref<16x32xbf16, #tpu.memory_space<vmem>>, vector<16x8xbf16>,
    %116 = vector.extract_strided_slice %41 {offsets = [0, 24], sizes = [16, 8], strides = [1, 1]} : vector<16x32xf32> to vector<16x8xf32>
    %117 = arith.truncf %116 : vector<16x8xf32> to vector<16x8xbf16>
    %118 = vector.extract_strided_slice %42 {offsets = [0, 24], sizes = [16, 8], strides = [1, 1]} : vector<16x32xf32> to vector<16x8xf32>
    %119 = arith.truncf %118 : vector<16x8xf32> to vector<16x8xbf16>
    %120 = vector.extract_strided_slice %43 {offsets = [0, 24], sizes = [16, 8], strides = [1, 1]} : vector<16x32xf32> to vector<16x8xf32>
    %121 = arith.truncf %120 : vector<16x8xf32> to vector<16x8xbf16>
    %cst_38 = arith.constant dense<0.000000e+00> : vector<16x16xf32>
    %122 = tpu.matmul %117, %119, %cst_38 {dimension_numbers = #tpu.dot_dimension_numbers<[1], [1], [0], [0], [0, 0, 1, 0], [], []>} : vector<16x8xbf16>, vector<16x8xbf16>, vector<16x16xf32> -> vector<16x16xf32>
    %123 = vector.broadcast %49 : vector<1x16xf32> to vector<16x16xf32>
    %124 = arith.addf %122, %123 : vector<16x16xf32>
    %cst_39 = arith.constant dense<0xFF800000> : vector<16xf32>
    %125 = vector.multi_reduction <maximumf>, %124, %cst_39 [1] : vector<16x16xf32> to vector<16xf32>
    %126 = vector.shape_cast %125 : vector<16xf32> to vector<16x1xf32>
    %127 = vector.broadcast %126 : vector<16x1xf32> to vector<16x16xf32>
    %128 = arith.subf %124, %127 : vector<16x16xf32>
    %129 = math.exp %128 : vector<16x16xf32>
    %cst_40 = arith.constant dense<0.000000e+00> : vector<16xf32>
    %130 = vector.multi_reduction <add>, %129, %cst_40 [1] : vector<16x16xf32> to vector<16xf32>
    %131 = vector.shape_cast %130 : vector<16xf32> to vector<16x1xf32>
    %132 = arith.truncf %129 : vector<16x16xf32> to vector<16x16xbf16>
    %cst_41 = arith.constant dense<0.000000e+00> : vector<16x8xf32>
    %133 = tpu.matmul %132, %121, %cst_41 {dimension_numbers = #tpu.dot_dimension_numbers<[1], [0], [0], [1], [0, 0, 1, 1], [], []>} : vector<16x16xbf16>, vector<16x8xbf16>, vector<16x8xf32> -> vector<16x8xf32>
    %134 = vector.broadcast %131 : vector<16x1xf32> to vector<16x8xf32>
    %135 = arith.divf %133, %134 : vector<16x8xf32>
    %136 = arith.truncf %135 : vector<16x8xf32> to vector<16x8xbf16>
    %c0_42 = arith.constant 0 : index
    %c24 = arith.constant 24 : index
    %137 = vector.load %arg16[%c0_42, %c24] : memref<16x32xbf16, #tpu.memory_space<vmem>>, vector<16x8xbf16>
    tpu.vector_store %arg16[%c0_42, %c24], %136 {strides = array<i32>} : memref<16x32xbf16, #tpu.memory_space<vmem>>, vector<16x8xbf16>,
    %c0_43 = arith.constant 0 : index
    %c0_44 = arith.constant 0 : index
    %138 = vector.load %arg16[%c0_43, %c0_44] : memref<16x32xbf16, #tpu.memory_space<vmem>>, vector<16x32xbf16>
    %c0_45 = arith.constant 0 : index
    %c0_46 = arith.constant 0 : index
    %c0_47 = arith.constant 0 : index
    %139 = vector.load %arg7[%c0_45, %c0_46, %c0_47] : memref<1x32x32xbf16, #tpu.memory_space<vmem>>, vector<1x32x32xbf16>
    %140 = vector.shape_cast %139 : vector<1x32x32xbf16> to vector<32x32xbf16>
    %cst_48 = arith.constant dense<0.000000e+00> : vector<16x32xf32>
    %141 = tpu.matmul %138, %140, %cst_48 {dimension_numbers = #tpu.dot_dimension_numbers<[1], [0], [0], [1], [0, 0, 1, 1], [], []>} : vector<16x32xbf16>, vector<32x32xbf16>, vector<16x32xf32> -> vector<16x32xf32>
    %c0_49 = arith.constant 0 : index
    %c0_50 = arith.constant 0 : index
    %c0_51 = arith.constant 0 : index
    %142 = vector.load %arg8[%c0_49, %c0_50, %c0_51] : memref<1x1x32xf32, #tpu.memory_space<vmem>>, vector<1x1x32xf32>
    %143 = vector.shape_cast %142 : vector<1x1x32xf32> to vector<1x32xf32>
    %144 = vector.broadcast %143 : vector<1x32xf32> to vector<16x32xf32>
    %145 = arith.addf %141, %144 : vector<16x32xf32>
    %146 = arith.addf %4, %145 : vector<16x32xf32>
    %c0_52 = arith.constant 0 : index
    %c0_53 = arith.constant 0 : index
    %c0_54 = arith.constant 0 : index
    %147 = vector.load %arg9[%c0_52, %c0_53, %c0_54] : memref<1x1x32xf32, #tpu.memory_space<vmem>>, vector<1x1x32xf32>
    %148 = vector.shape_cast %147 : vector<1x1x32xf32> to vector<1x32xf32>
    %c0_55 = arith.constant 0 : index
    %c0_56 = arith.constant 0 : index
    %c0_57 = arith.constant 0 : index
    %149 = vector.load %arg10[%c0_55, %c0_56, %c0_57] : memref<1x1x32xf32, #tpu.memory_space<vmem>>, vector<1x1x32xf32>
    %150 = vector.shape_cast %149 : vector<1x1x32xf32> to vector<1x32xf32>
    %cst_58 = arith.constant dense<0.000000e+00> : vector<16xf32>
    %151 = vector.multi_reduction <add>, %146, %cst_58 [1] : vector<16x32xf32> to vector<16xf32>
    %152 = vector.shape_cast %151 : vector<16xf32> to vector<16x1xf32>
    %cst_59 = arith.constant 3.200000e+01 : f32
    %153 = vector.broadcast %cst_59 : f32 to vector<16x1xf32>
    %154 = arith.divf %152, %153 : vector<16x1xf32>
    %155 = vector.broadcast %154 : vector<16x1xf32> to vector<16x32xf32>
    %156 = arith.subf %146, %155 : vector<16x32xf32>
    %157 = vector.broadcast %154 : vector<16x1xf32> to vector<16x32xf32>
    %158 = arith.subf %146, %157 : vector<16x32xf32>
    %159 = arith.mulf %156, %158 : vector<16x32xf32>
    %cst_60 = arith.constant dense<0.000000e+00> : vector<16xf32>
    %160 = vector.multi_reduction <add>, %159, %cst_60 [1] : vector<16x32xf32> to vector<16xf32>
    %161 = vector.shape_cast %160 : vector<16xf32> to vector<16x1xf32>
    %cst_61 = arith.constant 3.200000e+01 : f32
    %162 = vector.broadcast %cst_61 : f32 to vector<16x1xf32>
    %163 = arith.divf %161, %162 : vector<16x1xf32>
    %164 = vector.broadcast %154 : vector<16x1xf32> to vector<16x32xf32>
    %165 = arith.subf %146, %164 : vector<16x32xf32>
    %cst_62 = arith.constant 9.99999974E-6 : f32
    %166 = vector.broadcast %cst_62 : f32 to vector<16x1xf32>
    %167 = arith.addf %163, %166 : vector<16x1xf32>
    %168 = math.rsqrt %167 : vector<16x1xf32>
    %169 = vector.broadcast %168 : vector<16x1xf32> to vector<16x32xf32>
    %170 = arith.mulf %165, %169 : vector<16x32xf32>
    %171 = vector.broadcast %148 : vector<1x32xf32> to vector<16x32xf32>
    %172 = arith.mulf %170, %171 : vector<16x32xf32>
    %173 = vector.broadcast %150 : vector<1x32xf32> to vector<16x32xf32>
    %174 = arith.addf %172, %173 : vector<16x32xf32>
    %175 = arith.truncf %174 : vector<16x32xf32> to vector<16x32xbf16>
    %c0_63 = arith.constant 0 : index
    %c0_64 = arith.constant 0 : index
    %c0_65 = arith.constant 0 : index
    %176 = vector.load %arg11[%c0_63, %c0_64, %c0_65] : memref<1x32x128xbf16, #tpu.memory_space<vmem>>, vector<1x32x128xbf16>
    %177 = vector.shape_cast %176 : vector<1x32x128xbf16> to vector<32x128xbf16>
    %cst_66 = arith.constant dense<0.000000e+00> : vector<16x128xf32>
    %178 = tpu.matmul %175, %177, %cst_66 {dimension_numbers = #tpu.dot_dimension_numbers<[1], [0], [0], [1], [0, 0, 1, 1], [], []>} : vector<16x32xbf16>, vector<32x128xbf16>, vector<16x128xf32> -> vector<16x128xf32>
    %c0_67 = arith.constant 0 : index
    %c0_68 = arith.constant 0 : index
    %c0_69 = arith.constant 0 : index
    %179 = vector.load %arg12[%c0_67, %c0_68, %c0_69] : memref<1x1x128xf32, #tpu.memory_space<vmem>>, vector<1x1x128xf32>
    %180 = vector.shape_cast %179 : vector<1x1x128xf32> to vector<1x128xf32>
    %181 = vector.broadcast %180 : vector<1x128xf32> to vector<16x128xf32>
    %182 = arith.addf %178, %181 : vector<16x128xf32>
    %cst_70 = arith.constant 5.000000e-01 : f32
    %183 = vector.broadcast %cst_70 : f32 to vector<16x128xf32>
    %184 = arith.mulf %183, %182 : vector<16x128xf32>
    %cst_71 = arith.constant 0.707106769 : f32
    %185 = vector.broadcast %cst_71 : f32 to vector<16x128xf32>
    %186 = arith.mulf %182, %185 : vector<16x128xf32>
    %187 = math.erf %186 : vector<16x128xf32>
    %cst_72 = arith.constant 1.000000e+00 : f32
    %188 = vector.broadcast %cst_72 : f32 to vector<16x128xf32>
    %189 = arith.addf %188, %187 : vector<16x128xf32>
    %190 = arith.mulf %184, %189 : vector<16x128xf32>
    %191 = arith.truncf %190 : vector<16x128xf32> to vector<16x128xbf16>
    %c0_73 = arith.constant 0 : index
    %c0_74 = arith.constant 0 : index
    %c0_75 = arith.constant 0 : index
    %192 = vector.load %arg13[%c0_73, %c0_74, %c0_75] : memref<1x128x32xbf16, #tpu.memory_space<vmem>>, vector<1x128x32xbf16>
    %193 = vector.shape_cast %192 : vector<1x128x32xbf16> to vector<128x32xbf16>
    %cst_76 = arith.constant dense<0.000000e+00> : vector<16x32xf32>
    %194 = tpu.matmul %191, %193, %cst_76 {dimension_numbers = #tpu.dot_dimension_numbers<[1], [0], [0], [1], [0, 0, 1, 1], [], []>} : vector<16x128xbf16>, vector<128x32xbf16>, vector<16x32xf32> -> vector<16x32xf32>
    %c0_77 = arith.constant 0 : index
    %c0_78 = arith.constant 0 : index
    %c0_79 = arith.constant 0 : index
    %195 = vector.load %arg14[%c0_77, %c0_78, %c0_79] : memref<1x1x32xf32, #tpu.memory_space<vmem>>, vector<1x1x32xf32>
    %196 = vector.shape_cast %195 : vector<1x1x32xf32> to vector<1x32xf32>
    %197 = vector.broadcast %196 : vector<1x32xf32> to vector<16x32xf32>
    %198 = arith.addf %194, %197 : vector<16x32xf32>
    %199 = arith.addf %146, %198 : vector<16x32xf32>
    %c0_80 = arith.constant 0 : index
    %c0_81 = arith.constant 0 : index
    %c0_82 = arith.constant 0 : index
    %200 = vector.load %arg15[%c0_80, %c0_81, %c0_82] : memref<1x16x32xf32, #tpu.memory_space<vmem>>, vector<1x16x32xf32>
    %201 = vector.shape_cast %200 : vector<1x16x32xf32> to vector<16x32xf32>
    %202 = vector.shape_cast %199 : vector<16x32xf32> to vector<1x16x32xf32>
    tpu.vector_store %arg15[%c0_80, %c0_81, %c0_82], %202 {strides = array<i32>} : memref<1x16x32xf32, #tpu.memory_space<vmem>>, vector<1x16x32xf32>,
    return
  }
  func.func @transform_0(%arg0: i32, %arg1: i32) -> (i32, i32, i32) {
    %c0_i32 = arith.constant 0 : i32
    %c0_i32_0 = arith.constant 0 : i32
    %c0_i32_1 = arith.constant 0 : i32
    return %arg0, %c0_i32, %c0_i32_0 : i32, i32, i32
  }
  func.func @transform_1(%arg0: i32, %arg1: i32) -> (i32, i32, i32) {
    %c0_i32 = arith.constant 0 : i32
    %c0_i32_0 = arith.constant 0 : i32
    %c0_i32_1 = arith.constant 0 : i32
    return %arg1, %c0_i32, %c0_i32_0 : i32, i32, i32
  }
  func.func @transform_2(%arg0: i32, %arg1: i32) -> (i32, i32, i32) {
    %c0_i32 = arith.constant 0 : i32
    %c0_i32_0 = arith.constant 0 : i32
    %c0_i32_1 = arith.constant 0 : i32
    return %arg1, %c0_i32, %c0_i32_0 : i32, i32, i32
  }
  func.func @transform_3(%arg0: i32, %arg1: i32) -> (i32, i32, i32) {
    %c0_i32 = arith.constant 0 : i32
    %c0_i32_0 = arith.constant 0 : i32
    %c0_i32_1 = arith.constant 0 : i32
    return %arg1, %c0_i32, %c0_i32_0 : i32, i32, i32
  }
  func.func @transform_4(%arg0: i32, %arg1: i32) -> (i32, i32, i32) {
    %c0_i32 = arith.constant 0 : i32
    %c0_i32_0 = arith.constant 0 : i32
    %c0_i32_1 = arith.constant 0 : i32
    return %arg1, %c0_i32, %c0_i32_0 : i32, i32, i32
  }
  func.func @transform_5(%arg0: i32, %arg1: i32) -> (i32, i32, i32) {
    %c0_i32 = arith.constant 0 : i32
    %c0_i32_0 = arith.constant 0 : i32
    %c0_i32_1 = arith.constant 0 : i32
    return %arg1, %c0_i32, %c0_i32_0 : i32, i32, i32
  }
  func.func @transform_6(%arg0: i32, %arg1: i32) -> (i32, i32, i32) {
    %c0_i32 = arith.constant 0 : i32
    %c0_i32_0 = arith.constant 0 : i32
    %c0_i32_1 = arith.constant 0 : i32
    return %arg1, %c0_i32, %c0_i32_0 : i32, i32, i32
  }
  func.func @transform_7(%arg0: i32, %arg1: i32) -> (i32, i32, i32) {
    %c0_i32 = arith.constant 0 : i32
    %c0_i32_0 = arith.constant 0 : i32
    %c0_i32_1 = arith.constant 0 : i32
    return %arg1, %c0_i32, %c0_i32_0 : i32, i32, i32
  }
  func.func @transform_8(%arg0: i32, %arg1: i32) -> (i32, i32, i32) {
    %c0_i32 = arith.constant 0 : i32
    %c0_i32_0 = arith.constant 0 : i32
    %c0_i32_1 = arith.constant 0 : i32
    return %arg1, %c0_i32, %c0_i32_0 : i32, i32, i32
  }
  func.func @transform_9(%arg0: i32, %arg1: i32) -> (i32, i32, i32) {
    %c0_i32 = arith.constant 0 : i32
    %c0_i32_0 = arith.constant 0 : i32
    %c0_i32_1 = arith.constant 0 : i32
    return %arg1, %c0_i32, %c0_i32_0 : i32, i32, i32
  }
  func.func @transform_10(%arg0: i32, %arg1: i32) -> (i32, i32, i32) {
    %c0_i32 = arith.constant 0 : i32
    %c0_i32_0 = arith.constant 0 : i32
    %c0_i32_1 = arith.constant 0 : i32
    return %arg1, %c0_i32, %c0_i32_0 : i32, i32, i32
  }
  func.func @transform_11(%arg0: i32, %arg1: i32) -> (i32, i32, i32) {
    %c0_i32 = arith.constant 0 : i32
    %c0_i32_0 = arith.constant 0 : i32
    %c0_i32_1 = arith.constant 0 : i32
    return %arg1, %c0_i32, %c0_i32_0 : i32, i32, i32
  }
  func.func @transform_12(%arg0: i32, %arg1: i32) -> (i32, i32, i32) {
    %c0_i32 = arith.constant 0 : i32
    %c0_i32_0 = arith.constant 0 : i32
    %c0_i32_1 = arith.constant 0 : i32
    return %arg1, %c0_i32, %c0_i32_0 : i32, i32, i32
  }
  func.func @transform_13(%arg0: i32, %arg1: i32) -> (i32, i32, i32) {
    %c0_i32 = arith.constant 0 : i32
    %c0_i32_0 = arith.constant 0 : i32
    %c0_i32_1 = arith.constant 0 : i32
    return %arg0, %c0_i32, %c0_i32_0 : i32, i32, i32
  }
}

</mosaic_0001>

<bundles_post_ra>
// kernel: tpu_custom_call.1
= control target key start
LH: loop header
LB: loop body
LE: loop exit
PB: predicated region body
PF: predicated region fallthrough
CT: control target
= control target key end

     0   :  { %s2764_s0 = inlined_call_operand.vmem [shape: f32[2,16,32], index: 0, kind: input, shape index: {}]   ;;  %s2765_s1 = inlined_call_operand.vmem [shape: f32[2,1,32], index: 1, kind: input, shape index: {}]   ;;  %s2766_s2 = inlined_call_operand.vmem [shape: f32[2,1,32], index: 2, kind: input, shape index: {}]   ;;  %s2767_s3 = inlined_call_operand.vmem [shape: bf16[2,32,96], index: 3, kind: input, shape index: {}]   ;;  %s2768_s4 = inlined_call_operand.vmem [shape: f32[2,1,96], index: 4, kind: input, shape index: {}]   ;;  %s2769_s5 = inlined_call_operand.vmem [shape: bf16[2,32,32], index: 5, kind: input, shape index: {}]   ;;  %s2770_s6 = inlined_call_operand.vmem [shape: f32[2,1,32], index: 6, kind: input, shape index: {}]   ;;  %s2771_s7 = inlined_call_operand.vmem [shape: f32[2,1,32], index: 7, kind: input, shape index: {}]   ;;  %s2772_s8 = inlined_call_operand.vmem [shape: f32[2,1,32], index: 8, kind: input, shape index: {}]   ;;  %s2773_s9 = inlined_call_operand.vmem [shape: bf16[2,32,128], index: 9, kind: input, shape index: {}]   ;;  %s2774_s10 = inlined_call_operand.vmem [shape: f32[2,1,128], index: 10, kind: input, shape index: {}]   ;;  %s2775_s11 = inlined_call_operand.vmem [shape: bf16[2,128,32], index: 11, kind: input, shape index: {}]   ;;  %s2776_s12 = inlined_call_operand.vmem [shape: f32[2,1,32], index: 12, kind: input, shape index: {}]   ;;  %s2777_s13 = inlined_call_operand.hbm [shape: f32[2,16,32], index: 13, kind: output, shape index: {}]  }
   0x1   :  { %2793 = sst [smem:[#allocation19_spill]] %s2764_s0 }
   0x2   :  { %2794 = sst [smem:[#allocation20_spill]] %s2767_s3 }
   0x3   :  { %2795 = sst [smem:[#allocation21_spill]] %s2769_s5 }
   0x4   :  { %2796 = sst [smem:[#allocation22_spill]] %s2771_s7 }
   0x5   :  { %2797 = sst [smem:[#allocation23_spill]] %s2775_s11 }
   0x6   :  { %2798 = sst [smem:[#allocation24_spill]] %s2777_s13 }
   0x7   :  { %18 = vsyncpa [#allocation4], 0 }
   0x8   :  { %20 = vsyncpa [#allocation4 + $0x1], 0  ;;  %s2372_s25 = smov 0   ;;  %s2374_s26 = smov 0  }
   0x9   :  { %s2376_s27 = smov 0   ;;  %s2378_s28 = smov 0  }
   0xa   :  { %s2380_s29 = smov 0   ;;  %s2382_s30 = smov 0  }
   0xb   :  { %s2384_s14 = smov 0   ;;  %s2386_s15 = smov 0  }
   0xc LB: > { %2799 = sst [smem:[#allocation6_spill]] %s2253_s25  ;;  %s1837_s16 = sadd.s32 4294967295, %s2281_s15   ;;  %s2281_s15 = sphi %s2386_s15, %s26_s15   ;;  %s2277_s14 = sphi %s2384_s14, %s2840_s14   ;;  %s2273_s30 = sphi %s2382_s30, %s2839_s30   ;;  %s2269_s29 = sphi %s2380_s29, %s2838_s29   ;;  %s2265_s28 = sphi %s2378_s28, %s2837_s28   ;;  %s2261_s27 = sphi %s2376_s27, %s2836_s27   ;;  %s2257_s26 = sphi %s2374_s26, %s2835_s26   ;;  %s2253_s25 = sphi %s2372_s25, %s2834_s25  }
   0xd   : > { %2800 = sst [smem:[#allocation7_spill]] %s2257_s26  ;;  %s1838_s17 = sadd.s32 4294967294, %s2281_s15  }
   0xe   : > { %2801 = sst [smem:[#allocation8_spill]] %s2261_s27  ;;  %s35_s18 = sadd.s32 1, %s2273_s30 }
   0xf   : > { %2802 = sst [smem:[#allocation9_spill]] %s2265_s28  ;;  %p36_p0 = scmp.ge.s32.totalorder %s35_s18, 2 }
  0x10   : > { %2803 = sst [smem:[#allocation10_spill]] %s2269_s29  ;;  %s38_s19 = sadd.s32 1, %s2277_s14 }
  0x11   : > { %2804 = sst [smem:[#allocation11_spill]] %s2273_s30  ;;  %p393_p1 = scmp.ne.s32.totalorder %s2261_s27, %s2257_s26 }
  0x12   : > { %2805 = sst [smem:[#allocation12_spill]] %s2277_s14  ;;  %p394_p2 = scmp.eq.s32.totalorder %s1837_s16, 3 }
  0x13   : > { %2806 = sst [smem:[#allocation13_spill]] %s2281_s15  ;;  %s2842_s18 = smov (%p36_p0, %s35_s18), 0 }
  0x14   : > { %2807 = sst [smem:[#allocation14_spill]] %s2842_s18  ;;  %s2844_s19 = smov (!%p36_p0, %s38_s19), %s2277_s14 }
  0x15   : > { %p2421_p3 = por %p394_p2, %p393_p1  ;;  %p399_p4 = scmp.ne.s32.totalorder %s2257_s26, %s2253_s25 }
  0x16   : > { %p40_p5 = scmp.ge.s32.totalorder %s2844_s19, 2  ;;  %p400_p6 = scmp.eq.s32.totalorder %s1838_s17, 3 }
  0x17   : > { %s2808_s20 = scalar_select %p2421_p3, 1, 0 }
  0x18   : > { %p1841_p7 = scmp.ge.s32.totalorder %s2281_s15, 1  ;;  %p506_p8 = scmp.lt.s32.totalorder %s2281_s15, 5 }
  0x19   : > { %2809 = sst [smem:[#allocation15_spill]] %s2808_s20  ;;  %s2846_s19 = smov (%p40_p5, %s2844_s19), 0 }
  0x1a   : > { %2810 = sst [smem:[#allocation16_spill]] %s2846_s19  ;;  %p2431_p9 = por %p400_p6, %p399_p4 }
  0x1b   : > { %p507_p10 = pnand %p1841_p7, %p506_p8  ;;  %s380_s22 = ssub.s32 %s2277_s14, %s2846_s19 }
  0x1c   : > { %s2811_s21 = scalar_select %p2431_p9, 1, 0 }
  0x1d   : > { %s383_s23 = sadd.s32 1, %s2261_s27  ;;  %p381_p11 = scmp.eq.s32.totalorder %s380_s22, 0 }
  0x1e   : > { %2812 = sst [smem:[#allocation17_spill]] %s2811_s21  ;;  %510 = sbr.rel (%p507_p10) target bundleno = 2388 (0x954), region = 72 }
  0x1f   : > { %s2439_s24 = scalar_select %p381_p11, %s2261_s27, %s383_s23  }
  0x20   : > { %s2781_s16 = sand.u32 (!%p507_p10), 1, %s2257_s26   ;;  %p594_p12 = scmp.lt.s32.totalorder (!%p507_p10), %s2269_s29, 1 }
  0x21   : > { %2813 = sst [smem:[#allocation18_spill]] %s2439_s24  ;;  %s1842_s17 = sshll.u32 (!%p507_p10), %s2781_s16, 4 }
  0x22   : > { %p599_p13 = scmp.lt.s32.totalorder (!%p507_p10), %s2265_s28, 1  ;;  %s2814_s0 = sld [smem:[#allocation19_spill]] (!%p507_p10) }
  0x23   : > { %s595_s18 = scalar_select %p594_p12, %s2269_s29, 1 }
  0x24   : > { %s2448_s30 = scalar_select %p599_p13, %s2265_s28, 1 }
  0x25   : > { %s1901_s22 = sshll.u32 %s595_s18, 4  ;;  %s2815_s3 = sld [smem:[#allocation20_spill]] }
  0x26   : > { %s1902_s13 = sshll.u32 %s2448_s30, 4  ;;  %s2816_s5 = sld [smem:[#allocation21_spill]] }
  0x27   : > { %s2491_s18 = scalar_lea.vmem %s2773_s9, %s1902_s13  ;;  %s634_s11 = scalar_lea.vmem %s2774_s10, %s2448_s30 }
  0x28   : > { %s598_s14 = scalar_lea.vmem %s2814_s0, %s1901_s22  ;;  %s626_s0 = scalar_lea.vmem %s2772_s8, %s2448_s30 }
  0x29   : > { %s642_s25 = scalar_lea.vmem %s2776_s12, %s2448_s30  ;;  %s2818_s27 = sld [smem:[#allocation23_spill]] }
  0x2a   : > { %s2507_s26 = scalar_lea.vmem [#allocation3], %s1842_s17  ;;  %s2819_s20 = sld [smem:[#allocation9_spill]] }
  0x2b   : > { %s2465_s29 = scalar_lea.vmem %s2815_s3, %s1902_s13 }
  0x2c   : > { %s2474_s23 = scalar_lea.vmem %s2816_s5, %s1902_s13  ;;  %s1905_s5 = sshll.u32 %s2448_s30, 6 }
  0x2f   : > { %s2505_s7 = scalar_lea.vmem %s2818_s27, %s1905_s5 }
  0x30   : > { %p1853_p0 = scmp.ne.s32.totalorder %s2819_s20, 0 }
  0x32   : > { %647 = sbr.rel (%p1853_p0) target bundleno = 57 (0x39), region = 76 }
  0x37   : > { %v648_v0 = vld [vmem:[%s598_s14] sm:$0xff]  ;;  %vm650_vm0 = vcmask 261120   ;;  %v649_v1 = vld [vmem:[%s598_s14 + $0x8] sm:$0xff] }
  0x38   : > { %651 = vst.msk [vmem:[%s2507_s26] sm:$0xff] %vm650_vm0, %v648_v0  ;;  %652 = vst.msk [vmem:[%s2507_s26 + $0x8] sm:$0xff] %vm650_vm0, %v649_v1 }
  0x39 PF: > { %vm657_vm1 = vcmask 261120   ;;  %v2130_v16 = vld [vmem:[%s2465_s29 + $0x8] sm:$0xff]   ;;  %v2283_v17 = vmov 0.0   ;;  %vm2284_vm2 = vmmov 0   ;;  %v2131_v18 = vld [vmem:[%s2465_s29] sm:$0xff]   ;;  %s2820_s13 = scalar_lea.vmem %s2765_s1, %s2448_s30  ;;  %s2821_s14 = scalar_lea.vmem %s2766_s2, %s2448_s30  ;;  %vm777_vm3 = vcmask 64512  }
  0x3a   : > { %1949 = vmatprep.subr.bf16.mxu0 %v2283_v17  ;;  %1953 = vmatprep.mubr.msk.bf16.mxu0 %vm2284_vm2, %v2283_v17  ;;  %v1854_v27 = vld [vmem:[%s2820_s13] ss:$0 sm:$0xff]  ;;  %s2822_s19 = scalar_lea.vmem %s2768_s4, %s2448_s30  ;;  %s2285_s22 = smov 88   ;;  %v769_v55 = vlaneseq  ;;  %v2292_v57 = vmov -1e+30   ;;  %vm825_vm5 = vcmask 130048  }
  0x3b   : > { %1950 = vmatpush3.bf16.msra.mxu0 %v2130_v16  ;;  %1969 = vmatprep.subr.bf16.mxu1 %v2283_v17  ;;  %v1855_v31 = vld [vmem:[%s2821_s14] ss:$0 sm:$0xff]  ;;  %s2286_s24 = smov 96   ;;  %s2287_s16 = smov 120   ;;  %vm904_vm6 = vcmask 60416   ;;  %vm1040_vm7 = vcmask 126016  }
  0x3c   : > { %1951 = vmatprep.subr.bf16.mxu0 %v2283_v17  ;;  %1971 = vmatprep.mubr.msk.bf16.mxu1 %vm2284_vm2, %v2283_v17  ;;  %v1856_v37 = vld [vmem:[%s2822_s19] ss:$0 sm:$0xff]  ;;  %s2288_s15 = smov 112   ;;  %s2289_s21 = smov 80   ;;  %v770_v56 = vand.u32 127, %v769_v55  ;;  %vm1176_vm8 = vcmask 191616  }
  0x3d   : > { %s2290_s20 = smov 104   ;;  %s2291_s3 = smov 72   ;;  %vm1312_vm9 = vcmask 257216  }
  0x3e   : > { %vm771_vm4 = vcmp.lt.s32.totalorder %v770_v56, 8  ;;  %s2293_s5 = smov 64   ;;  %s2294_s13 = smov 56  }
  0x3f   : > { %v2513_v2 = vld [vmem:[%s2507_s26] sm:$0xff]  ;;  %v2516_v3 = vld [vmem:[%s2507_s26 + $0x8] sm:$0xff]  ;;  %1952 = vmatpush3.bf16.msra.mxu0 %v2131_v18  ;;  %v772_v58 = vsel %vm771_vm4, 0.0, %v2292_v57  ;;  %s2295_s27 = smov 48   ;;  %s2296_s29 = smov 40  }
  0x40   : > { %v658_v4 = vsel %vm657_vm1, %v2513_v2, 0.0  ;;  %v661_v5 = vsel %vm657_vm1, %v2516_v3, 0.0  ;;  %1957 = vmatprep.subr.bf16.mxu0 %v2283_v17  ;;  %s2297_s14 = smov 8   ;;  %s2298_s17 = smov 16  }
  0x41   : > { %659 = vadd.xlane.f32.xlu0 %v658_v4  ;;  %s2299_s28 = smov 24   ;;  %s2829_s19 = sld [smem:[#allocation24_spill]] }
  0x45   : > { %662 = vadd.xlane.f32.xlu0 %v661_v5 }
  0xca   : > { %v660_v6 = vpop.xlane.xlu0 %659 }
  0xcb   : > { %v665_v7 = vmul.f32 0.03125, %v660_v6 }
  0xcd   : > { %v667_v8 = vsub.f32 %v2513_v2, %v665_v7 }
  0xce   : > { %v663_v9 = vpop.xlane.xlu0 %662 }
  0xcf   : > { %v666_v10 = vmul.f32 0.03125, %v663_v9  ;;  %v669_v11 = vmul.f32 %v667_v8, %v667_v8 }
  0xd1   : > { %v668_v12 = vsub.f32 %v2516_v3, %v666_v10  ;;  %v671_v13 = vsel %vm657_vm1, %v669_v11, 0.0 }
  0xd2   : > { %672 = vadd.xlane.f32.xlu1 %v671_v13 }
  0xd3   : > { %v670_v14 = vmul.f32 %v668_v12, %v668_v12 }
  0xd5   : > { %v674_v15 = vsel %vm657_vm1, %v670_v14, 0.0 }
  0xd6   : > { %675 = vadd.xlane.f32.xlu1 %v674_v15 }
 0x15b   : > { %v673_v19 = vpop.xlane.xlu1 %672 }
 0x15c   : > { %v677_v20 = vmul.f32 0.03125, %v673_v19 }
 0x15e   : > { %v679_v21 = vadd.f32 1e-05, %v677_v20 }
 0x15f   : > { %v676_v22 = vpop.xlane.xlu1 %675 }
 0x160   : > { %2145 = vrsqrt.f32 %v679_v21  ;;  %v678_v23 = vmul.f32 0.03125, %v676_v22 }
 0x162   : > { %v680_v24 = vadd.f32 1e-05, %v678_v23 }
 0x164   : > { %2147 = vrsqrt.f32 %v680_v24 }
 0x16d   : > { %v2146_v25 = vpop.eup %2145 }
 0x16e   : > { %v683_v26 = vmul.f32 %v2146_v25, %v667_v8 }
 0x170   : > { %v691_v30 = vmul.f32 %v1854_v27, %v683_v26 }
 0x171   : > { %v2148_v28 = vpop.eup %2147 }
 0x172   : > { %v684_v29 = vmul.f32 %v2148_v28, %v668_v12  ;;  %v699_v33 = vadd.f32 %v1855_v31, %v691_v30 }
 0x174   : > { %v692_v32 = vmul.f32 %v1854_v27, %v684_v29 }
 0x176   : > { %v700_v34 = vadd.f32 %v1855_v31, %v692_v32 }
 0x178   : > { %v701_v35 = vpack.c.bf16 %v700_v34, %v699_v33 }
 0x17a   : > { %1954 = vmatmul.mubr.msk.bf16.vlgmr.msra.gmra.mxu0 %vm657_vm1, %v701_v35 }
 0x17b   : > { %1959 = vmatprep.mubr.msk.bf16.mxu0 %vm2284_vm2, %v2283_v17 }
 0x23a   : > { %v762_v36 = vpop.f32.mrf.mxu0 }
 0x23b   : > { %v763_v40 = vadd.f32 %v1856_v37, %v762_v36 }
 0x23c   : > { %v1955_v38 = vpop.f32.mrf.mxu0 }
 0x23e   : > { %v765_v39 = vpop.f32.mrf.mxu0 }
 0x23f   : > { %v766_v41 = vadd.f32 %v1856_v37, %v765_v39 }
 0x240   : > { %v1956_v42 = vpop.f32.mrf.mxu0 }
 0x241   : > { %v2554_v43 = vpack.c.bf16 %v766_v41, %v763_v40 }
 0x243   : > { %909 = vrot.lane.b32.xlu1 %v2554_v43, %s2285_s22  ;;  %775 = vrot.lane.b32.xlu0 %v2554_v43, %s2286_s24  ;;  %s2823_s22 = scalar_lea.vmem %s2770_s6, %s2448_s30  ;;  %s2300_s24 = smov [#allocation3]  }
 0x247   : > { %907 = vrot.lane.b32.xlu1 %v2554_v43, %s2287_s16  ;;  %1043 = vrot.lane.b32.xlu0 %v2554_v43, %s2288_s15  ;;  %s2824_s16 = sld [smem:[#allocation22_spill]] }
 0x24b   : > { %1045 = vrot.lane.b32.xlu1 %v2554_v43, %s2289_s21  ;;  %1179 = vrot.lane.b32.xlu0 %v2554_v43, %s2290_s20 }
 0x24d   : > { %s2825_s15 = scalar_lea.vmem %s2824_s16, %s2448_s30  ;;  %s2193_s16 = sshll.u32 %s2300_s24, 4  ;;  %s2194_s16 = int_to_ptr.vmem [resolvable:$false] %s2193_s16 }
 0x24f   : > { %1181 = vrot.lane.b32.xlu1 %v2554_v43, %s2291_s3 }
 0x2b5   : > { %v910_v44 = vpop.permute.xlu1 %909  ;;  %v776_v45 = vpop.permute.xlu0 %775 }
 0x2b6   : > { %v782_v46 = vsel %vm777_vm3, %v776_v45, 0  ;;  %v915_v47 = vsel %vm777_vm3, %v910_v44, 0 }
 0x2b7   : > { %1958 = vmatpush3.bf16.xpose.msra.mxu0 %v782_v46  ;;  %1970 = vmatpush3.bf16.xpose.msra.mxu1 %v915_v47 }
 0x2b8   : > { %1981 = vmatprep.subr.bf16.mxu1 %v2283_v17  ;;  %1963 = vmatprep.subr.bf16.mxu0 %v2283_v17 }
 0x2b9   : > { %v908_v48 = vpop.permute.xlu1 %907  ;;  %v1044_v52 = vpop.permute.xlu0 %1043 }
 0x2bd   : > { %v1046_v49 = vpop.permute.xlu1 %1045  ;;  %v1180_v54 = vpop.permute.xlu0 %1179 }
 0x2be   : > { %v1051_v50 = vsel %vm777_vm3, %v1046_v49, 0  ;;  %1960 = vmatmul.mubr.msk.bf16.vlgmr.msra.gmra.mxu0 %vm777_vm3, %v2554_v43  ;;  %1972 = vmatmul.mubr.msk.bf16.vlgmr.msra.gmra.mxu1 %vm777_vm3, %v908_v48 }
 0x2bf   : > { %1982 = vmatpush3.bf16.xpose.msra.mxu1 %v1051_v50  ;;  %1983 = vmatprep.mubr.msk.bf16.mxu1 %vm2284_vm2, %v2283_v17 }
 0x2c0   : > { %1993 = vmatprep.subr.bf16.mxu1 %v2283_v17  ;;  %1965 = vmatprep.mubr.msk.bf16.mxu0 %vm2284_vm2, %v2283_v17 }
 0x2c1   : > { %v1182_v51 = vpop.permute.xlu1 %1181 }
 0x2c2   : > { %v1187_v53 = vsel %vm777_vm3, %v1182_v51, 0 }
 0x2c6   : > { %1984 = vmatmul.mubr.msk.bf16.vlgmr.msra.gmra.mxu1 %vm777_vm3, %v1044_v52 }
 0x2c7   : > { %1994 = vmatpush3.bf16.xpose.msra.mxu1 %v1187_v53  ;;  %1995 = vmatprep.mubr.msk.bf16.mxu1 %vm2284_vm2, %v2283_v17 }
 0x2c8   : > { %2005 = vmatprep.subr.bf16.mxu1 %v2283_v17 }
 0x2ce   : > { %1996 = vmatmul.mubr.msk.bf16.vlgmr.msra.gmra.mxu1 %vm777_vm3, %v1180_v54 }
 0x2cf   : > { %2009 = vmatprep.mubr.msk.bf16.mxu1 %vm2284_vm2, %v2283_v17 }
 0x37e   : > { %v818_v59 = vpop.f32.mrf.mxu0  ;;  %v951_v60 = vpop.f32.mrf.mxu1 }
 0x37f   : > { %v819_v61 = vadd.f32 %v818_v59, %v772_v58  ;;  %v952_v62 = vadd.f32 %v951_v60, %v772_v58 }
 0x380   : > { %v1961_v63 = vpop.f32.mrf.mxu0  ;;  %v1973_v0 = vpop.f32.mrf.mxu1 }
 0x381   : > { %v958_v1 = vsel %vm825_vm5, %v952_v62, -inf  ;;  %v826_v4 = vsel %vm825_vm5, %v819_v61, -inf }
 0x382   : > { %v954_v5 = vpop.f32.mrf.mxu1  ;;  %959 = vmax.xlane.f32.xlu0 %v958_v1  ;;  %827 = vmax.xlane.f32.xlu1 %v826_v4  ;;  %v821_v6 = vpop.f32.mrf.mxu0 }
 0x383   : > { %v822_v7 = vadd.f32 %v821_v6, %v772_v58  ;;  %v955_v10 = vadd.f32 %v954_v5, %v772_v58 }
 0x384   : > { %v1962_v8 = vpop.f32.mrf.mxu0  ;;  %v1974_v9 = vpop.f32.mrf.mxu1 }
 0x385   : > { %v829_v11 = vsel %vm825_vm5, %v822_v7, -inf  ;;  %v961_v14 = vsel %vm825_vm5, %v955_v10, -inf }
 0x386   : > { %v1087_v12 = vpop.f32.mrf.mxu1  ;;  %830 = vmax.xlane.f32.xlu0 %v829_v11 }
 0x387   : > { %v1088_v26 = vadd.f32 %v1087_v12, %v772_v58 }
 0x388   : > { %v1985_v13 = vpop.f32.mrf.mxu1 }
 0x389   : > { %v1094_v28 = vsel %vm825_vm5, %v1088_v26, -inf }
 0x38a   : > { %v1090_v15 = vpop.f32.mrf.mxu1  ;;  %962 = vmax.xlane.f32.xlu0 %v961_v14 }
 0x38b   : > { %v2588_v16 = vadd.f32 %v1090_v15, %v772_v58 }
 0x38c   : > { %v1986_v18 = vpop.f32.mrf.mxu1 }
 0x38d   : > { %v1097_v19 = vsel %vm825_vm5, %v2588_v16, -inf }
 0x38e   : > { %v1223_v20 = vpop.f32.mrf.mxu1  ;;  %1098 = vmax.xlane.f32.xlu0 %v1097_v19 }
 0x38f   : > { %v1224_v27 = vadd.f32 %v1223_v20, %v772_v58 }
 0x390   : > { %v1997_v21 = vpop.f32.mrf.mxu1 }
 0x391   : > { %v1230_v29 = vsel %vm825_vm5, %v1224_v27, -inf }
 0x392   : > { %v1226_v22 = vpop.f32.mrf.mxu1 }
 0x393   : > { %v2592_v23 = vadd.f32 %v1226_v22, %v772_v58  ;;  %845 = vrot.lane.b32.xlu1 %v2554_v43, %s2293_s5  ;;  %s2826_s5 = sld [smem:[#allocation10_spill]] }
 0x394   : > { %v1998_v24 = vpop.f32.mrf.mxu1 }
 0x395   : > { %v1233_v25 = vsel %vm825_vm5, %v2592_v23, -inf }
 0x396   : > { %1234 = vmax.xlane.f32.xlu0 %v1233_v25 }
 0x3ac   : > { %977 = vrot.lane.b32.xlu0 %v2554_v43, %s2294_s13  ;;  %s2827_s13 = sld [smem:[#allocation7_spill]] }
 0x3b2   : > { %s2830_s30 = sand.u32 1, %s2827_s13  }
 0x3b7   : > { %1095 = vmax.xlane.f32.xlu1 %v1094_v28 }
 0x3bb   : > { %1231 = vmax.xlane.f32.xlu1 %v1230_v29 }
 0x3cc   : > { %1113 = vrot.lane.b32.xlu1 %v2554_v43, %s2295_s27 }
 0x3d0   : > { %1249 = vrot.lane.b32.xlu1 %v2554_v43, %s2296_s29  ;;  %s1914_s29 = sshll.u32 %s2826_s5, 8 }
 0x40b   : > { %v960_v30 = vpop.xlane.xlu0 %959  ;;  %v828_v31 = vpop.xlane.xlu1 %827 }
 0x40c   : > { %v964_v32 = vsub.f32 %v952_v62, %v960_v30  ;;  %v832_v33 = vsub.f32 %v819_v61, %v828_v31 }
 0x40e   : > { %v966_v34 = vmul.f32 1.442695, %v964_v32  ;;  %v834_v35 = vmul.f32 1.442695, %v832_v33 }
 0x40f   : > { %v846_v36 = vpop.permute.xlu1 %845  ;;  %v831_v37 = vpop.xlane.xlu0 %830 }
 0x410   : > { %2149 = vpow2.f32 %v966_v34  ;;  %v833_v38 = vsub.f32 %v822_v7, %v831_v37  ;;  %1964 = vmatpush3.bf16.msra.mxu0 %v846_v36 }
 0x411   : > { %1975 = vmatprep.subr.bf16.mxu0 %v2283_v17  ;;  %2151 = vpow2.f32 %v834_v35 }
 0x412   : > { %v836_v39 = vmul.f32 1.442695, %v833_v38 }
 0x413   : > { %v963_v40 = vpop.xlane.xlu0 %962 }
 0x414   : > { %2153 = vpow2.f32 %v836_v39  ;;  %v965_v41 = vsub.f32 %v955_v10, %v963_v40 }
 0x416   : > { %v968_v42 = vmul.f32 1.442695, %v965_v41 }
 0x417   : > { %v1099_v43 = vpop.xlane.xlu0 %1098 }
 0x418   : > { %2155 = vpow2.f32 %v968_v42  ;;  %v1101_v54 = vsub.f32 %v2588_v16, %v1099_v43 }
 0x41a   : > { %v1104_v55 = vmul.f32 1.442695, %v1101_v54 }
 0x41c   : > { %2157 = vpow2.f32 %v1104_v55  ;;  %v2133_v55 = vld [vmem:[%s2474_s23] sm:$0xff]  }
 0x41d   : > { %v2150_v44 = vpop.eup %2149 }
 0x41e   : > { %v970_v45 = vsel %vm825_vm5, %v2150_v44, 0.0  ;;  %v2152_v47 = vpop.eup %2151 }
 0x41f   : > { %971 = vadd.xlane.f32.xlu1 %v970_v45  ;;  %v1235_v46 = vpop.xlane.xlu0 %1234  ;;  %v838_v12 = vsel %vm825_vm5, %v2152_v47, 0.0 }
 0x420   : > { %v1237_v58 = vsub.f32 %v2592_v23, %v1235_v46 }
 0x421   : > { %v2154_v48 = vpop.eup %2153 }
 0x422   : > { %v844_v49 = vpack.c.bf16 %v2154_v48, %v2152_v47  ;;  %v1240_v62 = vmul.f32 1.442695, %v1237_v58  ;;  %v841_v15 = vsel %vm825_vm5, %v2154_v48, 0.0 }
 0x423   : > { %v978_v50 = vpop.permute.xlu0 %977 }
 0x424   : > { %1966 = vmatmul.mubr.msk.bf16.vlgmr.msra.gmra.mxu0 %vm825_vm5, %v844_v49 }
 0x425   : > { %v2156_v51 = vpop.eup %2155  ;;  %1976 = vmatpush3.bf16.msra.mxu0 %v978_v50  ;;  %1977 = vmatprep.mubr.msk.bf16.mxu0 %vm2284_vm2, %v2283_v17 }
 0x426   : > { %v973_v52 = vsel %vm825_vm5, %v2156_v51, 0.0  ;;  %1987 = vmatprep.subr.bf16.mxu0 %v2283_v17  ;;  %v976_v53 = vpack.c.bf16 %v2156_v51, %v2150_v44 }
 0x427   : > { %974 = vadd.xlane.f32.xlu0 %v973_v52  ;;  %v2132_v52 = vld [vmem:[%s2474_s23 + $0x8] sm:$0xff]  }
 0x428   : > { %2006 = vmatpush3.bf16.msra.mxu1 %v2132_v52  ;;  %v2138_v52 = vld [vmem:[%s2505_s7 + $0x30] sm:$0xff]  }
 0x429   : > { %v2158_v1 = vpop.eup %2157  ;;  %2007 = vmatprep.subr.bf16.mxu1 %v2283_v17 }
 0x42a   : > { %v1109_v10 = vsel %vm825_vm5, %v2158_v1, 0.0 }
 0x42c   : > { %1978 = vmatmul.mubr.msk.bf16.vlgmr.msra.gmra.mxu0 %vm825_vm5, %v976_v53  ;;  %2008 = vmatpush3.bf16.msra.mxu1 %v2133_v55  ;;  %v2141_v55 = vld [vmem:[%s2505_s7 + $0x18] sm:$0xff]  }
 0x42d   : > { %1989 = vmatprep.mubr.msk.bf16.mxu0 %vm2284_vm2, %v2283_v17  ;;  %2021 = vmatprep.subr.bf16.mxu1 %v2283_v17 }
 0x440   : > { %v1096_v56 = vpop.xlane.xlu1 %1095 }
 0x441   : > { %v1100_v57 = vsub.f32 %v1088_v26, %v1096_v56 }
 0x443   : > { %v1102_v59 = vmul.f32 1.442695, %v1100_v57 }
 0x444   : > { %v1232_v60 = vpop.xlane.xlu1 %1231 }
 0x445   : > { %2159 = vpow2.f32 %v1102_v59  ;;  %v1236_v61 = vsub.f32 %v1224_v27, %v1232_v60 }
 0x447   : > { %v1238_v63 = vmul.f32 1.442695, %v1236_v61 }
 0x448   : > { %v1114_v0 = vpop.permute.xlu1 %1113 }
 0x449   : > { %2161 = vpow2.f32 %v1238_v63  ;;  %1988 = vmatpush3.bf16.msra.mxu0 %v1114_v0 }
 0x44a   : > { %1999 = vmatprep.subr.bf16.mxu0 %v2283_v17  ;;  %2163 = vpow2.f32 %v1240_v62 }
 0x44c   : > { %v1250_v7 = vpop.permute.xlu1 %1249 }
 0x452   : > { %v2160_v4 = vpop.eup %2159 }
 0x453   : > { %v1106_v5 = vsel %vm825_vm5, %v2160_v4, 0.0  ;;  %v1112_v6 = vpack.c.bf16 %v2158_v1, %v2160_v4 }
 0x454   : > { %1107 = vadd.xlane.f32.xlu0 %v1106_v5 }
 0x455   : > { %1990 = vmatmul.mubr.msk.bf16.vlgmr.msra.gmra.mxu0 %vm825_vm5, %v1112_v6 }
 0x456   : > { %v2162_v8 = vpop.eup %2161  ;;  %2000 = vmatpush3.bf16.msra.mxu0 %v1250_v7  ;;  %2001 = vmatprep.mubr.msk.bf16.mxu0 %vm2284_vm2, %v2283_v17 }
 0x457   : > { %v1242_v9 = vsel %vm825_vm5, %v2162_v8, 0.0  ;;  %2013 = vmatprep.subr.bf16.mxu0 %v2283_v17  ;;  %v2164_v11 = vpop.eup %2163 }
 0x458   : > { %1243 = vadd.xlane.f32.xlu1 %v1242_v9  ;;  %1110 = vadd.xlane.f32.xlu0 %v1109_v10  ;;  %v1245_v13 = vsel %vm825_vm5, %v2164_v11, 0.0  ;;  %v1248_v14 = vpack.c.bf16 %v2164_v11, %v2162_v8 }
 0x45c   : > { %839 = vadd.xlane.f32.xlu1 %v838_v12  ;;  %1246 = vadd.xlane.f32.xlu0 %v1245_v13  ;;  %v1876_v12 = vld [vmem:[%s2823_s22] ss:$0 sm:$0xff]  ;;  %s2703_s22 = scalar_lea.hbm %s2829_s19, %s1914_s29 }
 0x45d   : > { %2002 = vmatmul.mubr.msk.bf16.vlgmr.msra.gmra.mxu0 %vm825_vm5, %v1248_v14 }
 0x45e   : > { %2017 = vmatprep.mubr.msk.bf16.mxu0 %vm2284_vm2, %v2283_v17 }
 0x460   : > { %842 = vadd.xlane.f32.xlu0 %v841_v15 }
 0x4a8   : > { %v972_v18 = vpop.xlane.xlu1 %971 }
 0x4a9   : > { %2165 = vrcp.f32 %v972_v18 }
 0x4b0   : > { %v975_v16 = vpop.xlane.xlu0 %974 }
 0x4b1   : > { %2167 = vrcp.f32 %v975_v16 }
 0x4b6   : > { %v2166_v29 = vpop.eup %2165 }
 0x4be   : > { %v2168_v34 = vpop.eup %2167 }
 0x4dd   : > { %v1108_v19 = vpop.xlane.xlu0 %1107 }
 0x4e1   : > { %v1244_v20 = vpop.xlane.xlu1 %1243  ;;  %v1111_v21 = vpop.xlane.xlu0 %1110 }
 0x4e4   : > { %v885_v22 = vpop.f32.mrf.mxu0 }
 0x4e5   : > { %v840_v23 = vpop.xlane.xlu1 %839  ;;  %v1247_v24 = vpop.xlane.xlu0 %1246 }
 0x4e6   : > { %2169 = vrcp.f32 %v840_v23  ;;  %v1967_v25 = vpop.f32.mrf.mxu0 }
 0x4e8   : > { %v888_v26 = vpop.f32.mrf.mxu0 }
 0x4e9   : > { %v843_v27 = vpop.xlane.xlu0 %842 }
 0x4ea   : > { %2171 = vrcp.f32 %v843_v27  ;;  %v1968_v28 = vpop.f32.mrf.mxu0 }
 0x4eb   : > { %2173 = vrcp.f32 %v1108_v19 }
 0x4ec   : > { %v1017_v30 = vpop.f32.mrf.mxu0  ;;  %2175 = vrcp.f32 %v1111_v21 }
 0x4ed   : > { %v1025_v31 = vmul.f32 %v2166_v29, %v1017_v30  ;;  %2177 = vrcp.f32 %v1244_v20 }
 0x4ee   : > { %v1979_v32 = vpop.f32.mrf.mxu0  ;;  %2179 = vrcp.f32 %v1247_v24 }
 0x4ef   : > { %v1908_v33 = vpack.c.bf16 %v1025_v31, %v1025_v31  ;;  %v2135_v32 = vld [vmem:[%s2491_s18 + $0x8] sm:$0xff]  }
 0x4f0   : > { %v1020_v35 = vpop.f32.mrf.mxu0  ;;  %2014 = vmatpush3.bf16.msra.mxu0 %v2135_v32 }
 0x4f1   : > { %v1027_v36 = vmul.f32 %v2168_v34, %v1020_v35  ;;  %1034 = vrot.lane.b32.xlu1 %v1908_v33, %s2297_s14  ;;  %v2136_v33 = vld [vmem:[%s2491_s18] sm:$0xff]   ;;  %2015 = vmatprep.subr.bf16.mxu0 %v2283_v17  ;;  %v2137_v34 = vld [vmem:[%s2505_s7 + $0x38] sm:$0xff]  }
 0x4f2   : > { %v1980_v37 = vpop.f32.mrf.mxu0 }
 0x4f3   : > { %v2170_v38 = vpop.eup %2169  ;;  %v1909_v39 = vpack.c.bf16 %v1027_v36, %v1027_v36 }
 0x4f4   : > { %v893_v40 = vmul.f32 %v2170_v38, %v885_v22  ;;  %2016 = vmatpush3.bf16.msra.mxu0 %v2136_v33 }
 0x4f5   : > { %1036 = vrot.lane.b32.xlu0 %v1909_v39, %s2297_s14 }
 0x4f6   : > { %v1906_v41 = vpack.c.bf16 %v893_v40, %v893_v40 }
 0x4f7   : > { %v2172_v42 = vpop.eup %2171 }
 0x4f8   : > { %905 = vst.msk [vmem:[#allocation2] sm:$0xf] %vm904_vm6, %v1906_v41  ;;  %v895_v43 = vmul.f32 %v2172_v42, %v888_v26  ;;  %v2174_v45 = vpop.eup %2173 }
 0x4f9   : > { %v2176_v50 = vpop.eup %2175 }
 0x4fa   : > { %v1907_v44 = vpack.c.bf16 %v895_v43, %v895_v43  ;;  %v2178_v57 = vpop.eup %2177  ;;  %v1881_v43 = vld [vmem:[%s2825_s15] ss:$0 sm:$0xff]  ;;  %s2195_s15 = scalar_lea.vmem %s2194_s16, 512 }
 0x4fb   : > { %v2180_v62 = vpop.eup %2179 }
 0x4fc   : > { %906 = vst.msk [vmem:[#allocation2 + $0x4] sm:$0xf] %vm904_vm6, %v1907_v44 }
 0x515   : > { %v1153_v46 = vpop.f32.mrf.mxu0 }
 0x516   : > { %v1161_v47 = vmul.f32 %v2174_v45, %v1153_v46 }
 0x517   : > { %v1991_v48 = vpop.f32.mrf.mxu0 }
 0x518   : > { %v1910_v49 = vpack.c.bf16 %v1161_v47, %v1161_v47  ;;  %v1882_v47 = vld [vmem:[%s626_s0] ss:$0 sm:$0xff] }
 0x519   : > { %v1156_v51 = vpop.f32.mrf.mxu0 }
 0x51a   : > { %v1163_v53 = vmul.f32 %v2176_v50, %v1156_v51  ;;  %1170 = vrot.lane.b32.xlu1 %v1910_v49, %s2298_s17 }
 0x51b   : > { %v1992_v54 = vpop.f32.mrf.mxu0 }
 0x51c   : > { %v1911_v56 = vpack.c.bf16 %v1163_v53, %v1163_v53  ;;  %v2139_v53 = vld [vmem:[%s2505_s7 + $0x28] sm:$0xff]   ;;  %v2140_v54 = vld [vmem:[%s2505_s7 + $0x20] sm:$0xff]  }
 0x51d   : > { %v1289_v58 = vpop.f32.mrf.mxu0 }
 0x51e   : > { %v1297_v59 = vmul.f32 %v2178_v57, %v1289_v58  ;;  %1172 = vrot.lane.b32.xlu1 %v1911_v56, %s2298_s17  ;;  %v2142_v56 = vld [vmem:[%s2505_s7 + $0x10] sm:$0xff]   ;;  %v2143_v57 = vld [vmem:[%s2505_s7 + $0x8] sm:$0xff]   ;;  %v2144_v58 = vld [vmem:[%s2505_s7] sm:$0xff]   ;;  %s1644_s17 = sshll.u32 %s2507_s26, 4  ;;  %s2706_s17 = int_to_ptr.vmem [resolvable:$true] %s1644_s17 }
 0x51f   : > { %v2003_v60 = vpop.f32.mrf.mxu0  ;;  %s2189_s18 = scalar_lea.vmem %s2706_s17, 256  ;;  %p2196_p5 = scmp.lt.s32.totalorder %s2706_s17, %s2194_s16 }
 0x520   : > { %v1912_v61 = vpack.c.bf16 %v1297_v59, %v1297_v59  ;;  %v1883_v59 = vld [vmem:[%s634_s11] ss:$0 sm:$0xff]  ;;  %p2190_p1 = scmp.ne.s32.totalorder %s2706_s17, %s2189_s18  ;;  %p2197_p6 = scmp.lt.s32.totalorder %s2195_s15, %s2189_s18 }
 0x521   : > { %v1292_v63 = vpop.f32.mrf.mxu0 }
 0x522   : > { %v1299_v0 = vmul.f32 %v2180_v62, %v1292_v63  ;;  %1306 = vrot.lane.b32.xlu1 %v1912_v61, %s2299_s28  ;;  %p2191_p2 = pnand %p2190_p1, %p2421_p3  ;;  %p2198_p7 = por %p2197_p6, %p2196_p5 }
 0x523   : > { %v2004_v1 = vpop.f32.mrf.mxu0 }
 0x524   : > { %v1913_v4 = vpack.c.bf16 %v1299_v0, %v1299_v0  ;;  %p2192_p4 = pneg %p2191_p2 }
 0x526   : > { %1308 = vrot.lane.b32.xlu0 %v1913_v4, %s2299_s28  ;;  %p2199_p8 = pnand %p2198_p7, %p2192_p4 }
 0x563   : > { %v1035_v5 = vpop.permute.xlu1 %1034 }
 0x564   : > { %1041 = vst.msk [vmem:[#allocation2] sm:$0xf] %vm1040_vm7, %v1035_v5 }
 0x567   : > { %v1037_v6 = vpop.permute.xlu0 %1036 }
 0x568   : > { %1042 = vst.msk [vmem:[#allocation2 + $0x4] sm:$0xf] %vm1040_vm7, %v1037_v6 }
 0x58c   : > { %v1171_v7 = vpop.permute.xlu1 %1170 }
 0x58d   : > { %1177 = vst.msk [vmem:[#allocation2] sm:$0xf] %vm1176_vm8, %v1171_v7 }
 0x590   : > { %v1173_v8 = vpop.permute.xlu1 %1172 }
 0x591   : > { %1178 = vst.msk [vmem:[#allocation2 + $0x4] sm:$0xf] %vm1176_vm8, %v1173_v8 }
 0x594   : > { %v1307_v9 = vpop.permute.xlu1 %1306 }
 0x595   : > { %1313 = vst.msk [vmem:[#allocation2] sm:$0xf] %vm1312_vm9, %v1307_v9 }
 0x598   : > { %v1309_v10 = vpop.permute.xlu0 %1308 }
 0x599   : > { %1314 = vst.msk [vmem:[#allocation2 + $0x4] sm:$0xf] %vm1312_vm9, %v1309_v10 }
 0x5a0   : > { %v2134_v11 = vld [vmem:[#allocation2] sm:$0xff]  }
 0x5a1   : > { %2010 = vmatmul.mubr.msk.bf16.vlgmr.msra.gmra.mxu1 %vm657_vm1, %v2134_v11 }
 0x5a2   : > { %2037 = vmatprep.mubr.msk.bf16.mxu1 %vm2284_vm2, %v2283_v17  ;;  %2022 = vmatpush3.bf16.msra.mxu1 %v2137_v34 }
 0x5a3   : > { %2023 = vmatprep.subr.bf16.mxu1 %v2283_v17 }
 0x5a6   : > { %2024 = vmatpush3.bf16.msra.mxu1 %v2138_v52 }
 0x5a7   : > { %2025 = vmatprep.subr.bf16.mxu1 %v2283_v17 }
 0x5aa   : > { %2026 = vmatpush3.bf16.msra.mxu1 %v2139_v53 }
 0x5ab   : > { %2027 = vmatprep.subr.bf16.mxu1 %v2283_v17 }
 0x5ae   : > { %2028 = vmatpush3.bf16.msra.mxu1 %v2140_v54 }
 0x5af   : > { %2029 = vmatprep.subr.bf16.mxu1 %v2283_v17 }
 0x5b2   : > { %2030 = vmatpush3.bf16.msra.mxu1 %v2141_v55 }
 0x5b3   : > { %2031 = vmatprep.subr.bf16.mxu1 %v2283_v17 }
 0x5b6   : > { %2032 = vmatpush3.bf16.msra.mxu1 %v2142_v56 }
 0x5b7   : > { %2033 = vmatprep.subr.bf16.mxu1 %v2283_v17 }
 0x5ba   : > { %2034 = vmatpush3.bf16.msra.mxu1 %v2143_v57 }
 0x5bb   : > { %2035 = vmatprep.subr.bf16.mxu1 %v2283_v17 }
 0x5be   : > { %2036 = vmatpush3.bf16.msra.mxu1 %v2144_v58 }
 0x661   : > { %v1382_v13 = vpop.f32.mrf.mxu1 }
 0x662   : > { %v1383_v14 = vadd.f32 %v1876_v12, %v1382_v13 }
 0x663   : > { %v2011_v15 = vpop.f32.mrf.mxu1 }
 0x664   : > { %v2643_v16 = vadd.f32 %v1383_v14, %v2513_v2  ;;  %v1887_v14 = vld [vmem:[%s642_s25] ss:$0 sm:$0xff]  ;;  %s2712_s25 = scalar_lea.sflag [#allocation4], %s2830_s30 }
 0x665   : > { %v1385_v18 = vpop.f32.mrf.mxu1 }
 0x666   : > { %v1386_v19 = vadd.f32 %v1876_v12, %v1385_v18  ;;  %v1393_v20 = vsel %vm657_vm1, %v2643_v16, 0.0 }
 0x667   : > { %1394 = vadd.xlane.f32.xlu1 %v1393_v20  ;;  %v2012_v21 = vpop.f32.mrf.mxu1 }
 0x668   : > { %v2648_v22 = vadd.f32 %v1386_v19, %v2516_v3 }
 0x66a   : > { %v1396_v23 = vsel %vm657_vm1, %v2648_v22, 0.0 }
 0x66b   : > { %1397 = vadd.xlane.f32.xlu0 %v1396_v23 }
 0x6f0   : > { %v1395_v24 = vpop.xlane.xlu1 %1394 }
 0x6f1   : > { %v1399_v25 = vmul.f32 0.03125, %v1395_v24 }
 0x6f3   : > { %v1401_v2 = vsub.f32 %v2643_v16, %v1399_v25 }
 0x6f4   : > { %v1398_v26 = vpop.xlane.xlu0 %1397 }
 0x6f5   : > { %v1400_v27 = vmul.f32 0.03125, %v1398_v26  ;;  %v1403_v28 = vmul.f32 %v1401_v2, %v1401_v2 }
 0x6f7   : > { %v1402_v29 = vsub.f32 %v2648_v22, %v1400_v27  ;;  %v1405_v30 = vsel %vm657_vm1, %v1403_v28, 0.0 }
 0x6f8   : > { %1406 = vadd.xlane.f32.xlu0 %v1405_v30 }
 0x6f9   : > { %v1404_v3 = vmul.f32 %v1402_v29, %v1402_v29 }
 0x6fb   : > { %v1408_v31 = vsel %vm657_vm1, %v1404_v3, 0.0 }
 0x6fc   : > { %1409 = vadd.xlane.f32.xlu0 %v1408_v31 }
 0x781   : > { %v1407_v35 = vpop.xlane.xlu0 %1406 }
 0x782   : > { %v1411_v36 = vmul.f32 0.03125, %v1407_v35 }
 0x784   : > { %v1413_v37 = vadd.f32 1e-05, %v1411_v36 }
 0x785   : > { %v1410_v38 = vpop.xlane.xlu0 %1409 }
 0x786   : > { %2181 = vrsqrt.f32 %v1413_v37  ;;  %v1412_v39 = vmul.f32 0.03125, %v1410_v38 }
 0x788   : > { %v1414_v40 = vadd.f32 1e-05, %v1412_v39 }
 0x78a   : > { %2183 = vrsqrt.f32 %v1414_v40 }
 0x793   : > { %v2182_v41 = vpop.eup %2181 }
 0x794   : > { %v1417_v42 = vmul.f32 %v2182_v41, %v1401_v2 }
 0x796   : > { %v1425_v46 = vmul.f32 %v1881_v43, %v1417_v42 }
 0x797   : > { %v2184_v44 = vpop.eup %2183 }
 0x798   : > { %v1418_v45 = vmul.f32 %v2184_v44, %v1402_v29  ;;  %v1433_v49 = vadd.f32 %v1882_v47, %v1425_v46 }
 0x79a   : > { %v1426_v48 = vmul.f32 %v1881_v43, %v1418_v45 }
 0x79c   : > { %v1434_v50 = vadd.f32 %v1882_v47, %v1426_v48 }
 0x79e   : > { %v1435_v51 = vpack.c.bf16 %v1434_v50, %v1433_v49 }
 0x7a0   : > { %2018 = vmatmul.mubr.msk.bf16.vlgmr.msra.gmra.mxu0 %vm657_vm1, %v1435_v51 }
 0x860   : > { %v1496_v60 = vpop.f32.mrf.mxu0 }
 0x861   : > { %v1497_v61 = vadd.f32 %v1883_v59, %v1496_v60 }
 0x862   : > { %v2019_v62 = vpop.f32.mrf.mxu0 }
 0x863   : > { %v1505_v63 = vmul.f32 0.70710677, %v1497_v61  ;;  %v1503_v8 = vmul.f32 0.5, %v1497_v61 }
 0x864   : > { %v1499_v0 = vpop.f32.mrf.mxu0 }
 0x865   : > { %2185 = verf.f32 %v1505_v63  ;;  %v1500_v1 = vadd.f32 %v1883_v59, %v1499_v0 }
 0x866   : > { %v2020_v4 = vpop.f32.mrf.mxu0 }
 0x867   : > { %v1506_v5 = vmul.f32 0.70710677, %v1500_v1  ;;  %v1504_v9 = vmul.f32 0.5, %v1500_v1 }
 0x869   : > { %2187 = verf.f32 %v1506_v5 }
 0x872   : > { %v2186_v17 = vpop.eup %2185 }
 0x873   : > { %v1509_v6 = vadd.f32 1.0, %v2186_v17 }
 0x875   : > { %v1511_v11 = vmul.f32 %v1509_v6, %v1503_v8 }
 0x876   : > { %v2188_v7 = vpop.eup %2187 }
 0x877   : > { %v1510_v10 = vadd.f32 1.0, %v2188_v7 }
 0x879   : > { %v1512_v12 = vmul.f32 %v1510_v10, %v1504_v9 }
 0x87b   : > { %v1513_v13 = vpack.c.bf16 %v1512_v12, %v1511_v11 }
 0x87d   : > { %2038 = vmatmul.mubr.bf16.vlgmr.msra.gmra.mxu1 %v1513_v13 }
 0x93d   : > { %v1619_v15 = vpop.f32.mrf.mxu1 }
 0x93e   : > { %v1620_v18 = vadd.f32 %v1887_v14, %v1619_v15 }
 0x93f   : > { %v2039_v19 = vpop.f32.mrf.mxu1 }
 0x940   : > { %v1626_v20 = vadd.f32 %v1620_v18, %v2643_v16 }
 0x941   : > { %v1622_v21 = vpop.f32.mrf.mxu1 }
 0x942   : > { %1628 = vst.msk [vmem:[%s2507_s26] sm:$0xff] %vm657_vm1, %v1626_v20  ;;  %v1623_v23 = vadd.f32 %v1887_v14, %v1622_v21 }
 0x943   : > { %v2040_v24 = vpop.f32.mrf.mxu1 }
 0x944   : > { %v1627_v25 = vadd.f32 %v1623_v23, %v2648_v22 }
 0x946   : > { %1629 = vst.msk [vmem:[%s2507_s26 + $0x8] sm:$0xff] %vm657_vm1, %v1627_v25 }
 0x947   : > { %2202 = shalt.err (!%p2199_p8)
}
 0x948   : > { %s2203_s26 = scalar_lea.hbm %s2703_s22, 256  ;;  %s2207_s0 = scalar_lea.hbm %s2829_s19, 512 }
 0x949   : > { %p2204_p10 = scmp.ne.s32.totalorder %s2703_s22, %s2203_s26  ;;  %p2208_p13 = scmp.lt.s32.totalorder %s2703_s22, %s2829_s19 }
 0x94a   : > { %p2209_p0 = scmp.lt.s32.totalorder %s2207_s0, %s2203_s26 }
 0x94b   : > { %p2205_p11 = pnand %p2204_p10, %p2421_p3 }
 0x94c   : > { %p2210_p1 = por %p2209_p0, %p2208_p13 }
 0x94d   : > { %p2206_p12 = pneg %p2205_p11 }
 0x94f   : > { %p2211_p2 = pnand %p2210_p1, %p2206_p12 }
 0x951   : > { %2214 = shalt.err (!%p2211_p2)
}
 0x952   : > { %s2301_s7 = smov 128  }
 0x953   : > { %2041 = dma.vmem_to_hbm [thread:$0]  (%p2421_p3), %s2706_s17, 256, %s2703_s22, %s2712_s25, %s2301_s7, %s2301_s7, %s2297_s14  }
 0x954 PF: > { %s2831_s11 = sld [smem:[#allocation13_spill]] }
 0x955   : > { %s2832_s13 = sld [smem:[#allocation6_spill]] }
 0x95a   : > { %p2047_p4 = scmp.ge.s32.totalorder %s2831_s11, 2 }
 0x95b   : > { %s1659_s28 = sand.u32 1, %s2832_s13  }
 0x95c   : > { %p2044_p5 = pnand %p2047_p4, %p2431_p9  ;;  %s1660_s23 = scalar_lea.sflag [#allocation4], %s1659_s28 }
 0x95e   : > { %p2045_p6 = pneg %p2044_p5 }
 0x960   : > { %2248 = dma.done.wait (%p2045_p6), %s1660_s23, 256  }
 0x961   : > { %2250 = vsyncadd (%p2045_p6), %s1660_s23, 4294967040  ;;  %s26_s15 = sadd.s32 1, %s2831_s11   ;;  %s2834_s25 = sld [smem:[#allocation7_spill]] }
 0x962   : > { %p23_p7 = scmp.ge.s32.totalorder %s26_s15, 6   ;;  %s2835_s26 = sld [smem:[#allocation8_spill]] }
 0x963   : > { %s2836_s27 = sld [smem:[#allocation18_spill]] }
 0x964   : > { %s2837_s28 = sld [smem:[#allocation11_spill]]  ;;  %25 = sbr.rel (!%p23_p7) target bundleno = 12 (0xc), region = 147 }
 0x965   : > { %s2838_s29 = sld [smem:[#allocation12_spill]] }
 0x966   : > { %s2839_s30 = sld [smem:[#allocation14_spill]] }
 0x967   : > { %s2840_s14 = sld [smem:[#allocation16_spill]] }
 0x969   :  { %1665 = vsyncpa [#allocation4], 1 }
 0x96a   :  { %1667 = vsyncpa [#allocation4 + $0x1], 1 }

</bundles_post_ra>
